<compile_context>
chip_gen: v6e
topology: v6e:2x2x1
jax: 0.10.0
libtpu: 0.0.40
codegen_flags: <defaults>
</compile_context>

<pallas_src>
import functools
import math

import jax
import jax.numpy as jnp
from jax.experimental import pallas as pl
from jax.experimental.pallas import tpu as pltpu


# ----------------------------- kernel ---------------------------------------


def _layernorm(v, eps=1e-6):
    # LayerNorm over last dim, no affine (elementwise_affine=False), eps=1e-6.
    mu = jnp.mean(v, axis=-1, keepdims=True)
    var = jnp.mean((v - mu) ** 2, axis=-1, keepdims=True)
    return (v - mu) * jax.lax.rsqrt(var + eps)


def _gelu_tanh(v):
    # nn.GELU(approximate='tanh')
    return 0.5 * v * (1.0 + jnp.tanh(0.7978845608028654 * (v + 0.044715 * v * v * v)))


def dit_block_kernel(
    x_ref, mod_ref,
    wqkv_ref, bqkv_ref,
    wproj_ref, bproj_ref,
    wfc1_ref, bfc1_ref,
    wfc2_ref, bfc2_ref,
    out_ref,
    q_ref, k_ref, v_ref, attn_ref,
    *, num_heads,
):
    x = x_ref[0]                 # (N, D) f32
    mod = mod_ref[0]             # (6, D) f32 — precomputed adaLN modulation
    N, D = x.shape
    Dh = D // num_heads
    cd = wqkv_ref.dtype          # matmul compute dtype (bf16 or f32)

    shift_msa = mod[0:1, :]
    scale_msa = mod[1:2, :]
    gate_msa = mod[2:3, :]
    shift_mlp = mod[3:4, :]
    scale_mlp = mod[4:5, :]
    gate_mlp = mod[5:6, :]

    # ---------------- attention branch ----------------
    xm = _layernorm(x) * (1.0 + scale_msa) + shift_msa           # (N, D) f32

    qkv = (
        jnp.dot(xm.astype(cd), wqkv_ref[...],
                preferred_element_type=jnp.float32)
        + bqkv_ref[...]
    )                                                            # (N, 3D) f32
    qkv_c = qkv.astype(cd)

    # Assemble head-major (H, N, Dh) q/k/v in VMEM scratch (static slices;
    # no in-kernel transposes). The 1/sqrt(Dh) scale is already folded into
    # the q columns of wqkv by the wrapper.
    for h in range(num_heads):
        q_ref[h] = qkv_c[:, h * Dh:(h + 1) * Dh]
        k_ref[h] = qkv_c[:, D + h * Dh:D + (h + 1) * Dh]
        v_ref[h] = qkv_c[:, 2 * D + h * Dh:2 * D + (h + 1) * Dh]
    q = q_ref[...]               # (H, N, Dh)
    k = k_ref[...]
    v = v_ref[...]

    # Batched (over heads) attention — single dot_general per step, no kh.T.
    logits = jnp.einsum("hnd,hmd->hnm", q, k,
                        preferred_element_type=jnp.float32)      # (H, N, N)
    logits = logits - jnp.max(logits, axis=-1, keepdims=True)
    p = jnp.exp(logits)
    p = p * pl.reciprocal(jnp.sum(p, axis=-1, keepdims=True), approx=True)
    o = jnp.einsum("hnm,hmd->hnd", p.astype(cd), v,
                   preferred_element_type=jnp.float32)           # (H, N, Dh)

    # Merge heads back into lane space via static slice stores (compute
    # dtype), then one full-K projection matmul.
    for h in range(num_heads):
        attn_ref[:, h * Dh:(h + 1) * Dh] = o[h].astype(cd)       # (N, D) cd
    attn = (
        jnp.dot(attn_ref[...], wproj_ref[...],
                preferred_element_type=jnp.float32)
        + bproj_ref[...]
    )

    x = x + gate_msa * attn      # gated residual (gate broadcasts over tokens)

    # ---------------- MLP branch ----------------
    xm2 = _layernorm(x) * (1.0 + scale_mlp) + shift_mlp
    h1 = (
        jnp.dot(xm2.astype(cd), wfc1_ref[...],
                preferred_element_type=jnp.float32)
        + bfc1_ref[...]
    )
    h1 = _gelu_tanh(h1)
    h2 = (
        jnp.dot(h1.astype(cd), wfc2_ref[...],
                preferred_element_type=jnp.float32)
        + bfc2_ref[...]
    )

    out_ref[0] = (x + gate_mlp * h2).astype(out_ref.dtype)


# ----------------------------- wrapper ---------------------------------------


def dit_block(x, c, params, num_heads, compute_dtype=jnp.bfloat16):
    B, N, D = x.shape
    Dh = D // num_heads
    (wmod, bmod, wqkv, bqkv, wproj, bproj, wfc1, bfc1, wfc2, bfc2) = params

    # adaLN modulation hoisted out of the kernel (1-row GEMM; keeps W_mod,
    # the single largest weight, out of kernel VMEM).  Computed in f32.
    mod = (jax.nn.silu(c.astype(jnp.float32)) @ wmod + bmod).reshape(B, 6, D)

    # Fold the 1/sqrt(Dh) attention scale into the q columns of the qkv proj.
    scale = Dh ** -0.5
    wqkv = wqkv.at[:, :D].multiply(scale)
    bqkv = bqkv.at[:, :D].multiply(scale)

    # Weights feed the MXU in the compute dtype; f32 accumulation in-kernel.
    cd = compute_dtype
    wqkv_c = wqkv.astype(cd)
    wproj_c = wproj.astype(cd)
    wfc1_c = wfc1.astype(cd)
    wfc2_c = wfc2.astype(cd)

    def full_spec(a):
        nd = a.ndim
        return pl.BlockSpec(a.shape, lambda b, _nd=nd: (0,) * _nd)

    kernel = functools.partial(dit_block_kernel, num_heads=num_heads)

    return pl.pallas_call(
        kernel,
        out_shape=jax.ShapeDtypeStruct((B, N, D), x.dtype),
        grid_spec=pltpu.PrefetchScalarGridSpec(
            num_scalar_prefetch=0,
            grid=(B,),
            in_specs=[
                pl.BlockSpec((1, N, D), lambda b: (b, 0, 0)),   # x
                pl.BlockSpec((1, 6, D), lambda b: (b, 0, 0)),   # adaLN modulation
                full_spec(wqkv_c), full_spec(bqkv),
                full_spec(wproj_c), full_spec(bproj),
                full_spec(wfc1_c), full_spec(bfc1),
                full_spec(wfc2_c), full_spec(bfc2),
            ],
            out_specs=pl.BlockSpec((1, N, D), lambda b: (b, 0, 0)),
            scratch_shapes=[
                pltpu.VMEM((num_heads, N, Dh), cd),   # q, head-major
                pltpu.VMEM((num_heads, N, Dh), cd),   # k
                pltpu.VMEM((num_heads, N, Dh), cd),   # v
                pltpu.VMEM((N, D), cd),               # merged attention heads
            ],
        ),
        compiler_params=pltpu.CompilerParams(
            dimension_semantics=("parallel",),        # batch shards across TCs
            vmem_limit_bytes=64 * 1024 * 1024,
        ),
    )(x, mod, wqkv_c, bqkv, wproj_c, bproj, wfc1_c, bfc1, wfc2_c, bfc2)


# ------------------------- pure-JAX reference --------------------------------


def dit_block_ref(x, c, params, num_heads):
    (wmod, bmod, wqkv, bqkv, wproj, bproj, wfc1, bfc1, wfc2, bfc2) = params
    B, N, D = x.shape
    Dh = D // num_heads
    scale = Dh ** -0.5

    def ln(v):
        mu = jnp.mean(v, axis=-1, keepdims=True)
        var = jnp.mean((v - mu) ** 2, axis=-1, keepdims=True)
        return (v - mu) / jnp.sqrt(var + 1e-6)

    mod = jax.nn.silu(c) @ wmod + bmod[0]              # (B, 6D)
    s_msa, sc_msa, g_msa, s_mlp, sc_mlp, g_mlp = jnp.split(mod, 6, axis=1)

    xm = ln(x) * (1.0 + sc_msa[:, None, :]) + s_msa[:, None, :]
    qkv = xm @ wqkv + bqkv[0]                          # (B, N, 3D)
    qkv = qkv.reshape(B, N, 3, num_heads, Dh).transpose(2, 0, 3, 1, 4)
    q, k, v = qkv[0] * scale, qkv[1], qkv[2]           # (B, H, N, Dh)
    a = jax.nn.softmax(jnp.einsum("bhnd,bhmd->bhnm", q, k), axis=-1)
    o = jnp.einsum("bhnm,bhmd->bhnd", a, v)
    o = o.transpose(0, 2, 1, 3).reshape(B, N, D)
    o = o @ wproj + bproj[0]
    x = x + g_msa[:, None, :] * o

    xm2 = ln(x) * (1.0 + sc_mlp[:, None, :]) + s_mlp[:, None, :]
    h = jax.nn.gelu(xm2 @ wfc1 + bfc1[0], approximate=True)
    h = h @ wfc2 + bfc2[0]
    return x + g_mlp[:, None, :] * h


# ----------------------------- main ------------------------------------------


if __name__ == "__main__":
    B, N, D = 2, 16, 32
    NUM_HEADS = 4
    MLP_RATIO = 4.0
    M = int(D * MLP_RATIO)

    key = jax.random.PRNGKey(0)
    keys = jax.random.split(key, 12)

    def init_w(k, shape, fan_in):
        return (jax.random.normal(k, shape, jnp.float32) / math.sqrt(fan_in)).astype(
            jnp.float32
        )

    # weights stored as (in, out) so the kernel does y = x @ W + b
    wmod = init_w(keys[0], (D, 6 * D), D)
    bmod = 0.01 * jax.random.normal(keys[1], (1, 6 * D), jnp.float32)
    wqkv = init_w(keys[2], (D, 3 * D), D)
    bqkv = 0.01 * jax.random.normal(keys[3], (1, 3 * D), jnp.float32)
    wproj = init_w(keys[4], (D, D), D)
    bproj = 0.01 * jax.random.normal(keys[5], (1, D), jnp.float32)
    wfc1 = init_w(keys[6], (D, M), D)
    bfc1 = 0.01 * jax.random.normal(keys[7], (1, M), jnp.float32)
    wfc2 = init_w(keys[8], (M, D), M)
    bfc2 = 0.01 * jax.random.normal(keys[9], (1, D), jnp.float32)
    params = (wmod, bmod, wqkv, bqkv, wproj, bproj, wfc1, bfc1, wfc2, bfc2)

    x = jax.random.normal(keys[10], (B, N, D), jnp.float32)
    c = jax.random.normal(keys[11], (B, D), jnp.float32)

    ref = dit_block_ref(x, c, params, NUM_HEADS)

    # f32-matmul run: tight correctness check (approx reciprocal + folded
    # scale account for the small slack vs. the exact reference).
    out_f32 = jax.block_until_ready(
        dit_block(x, c, params, NUM_HEADS, compute_dtype=jnp.float32)
    )
    assert out_f32.shape == (B, N, D)
    err_f32 = float(jnp.max(jnp.abs(out_f32 - ref)))
    assert jnp.allclose(out_f32, ref, atol=5e-3, rtol=5e-3), err_f32

    # bf16-matmul run (the optimized configuration): looser tolerance.
    out_bf16 = jax.block_until_ready(
        dit_block(x, c, params, NUM_HEADS, compute_dtype=jnp.bfloat16)
    )
    assert out_bf16.shape == (B, N, D)
    err_bf16 = float(jnp.max(jnp.abs(out_bf16 - ref)))
    assert jnp.allclose(out_bf16, ref, atol=1e-1, rtol=1e-1), err_bf16

    print("KERNEL_OK")
</pallas_src>

<mosaic_0001>
module attributes {stable_mosaic.version = 11 : i64} {
  func.func @dit_block_kernel(%arg0: i32, %arg1: memref<1x16x32xf32, #tpu.memory_space<vmem>>, %arg2: memref<1x6x32xf32, #tpu.memory_space<vmem>>, %arg3: memref<32x96xf32, #tpu.memory_space<vmem>>, %arg4: memref<1x96xf32, #tpu.memory_space<vmem>>, %arg5: memref<32x32xf32, #tpu.memory_space<vmem>>, %arg6: memref<1x32xf32, #tpu.memory_space<vmem>>, %arg7: memref<32x128xf32, #tpu.memory_space<vmem>>, %arg8: memref<1x128xf32, #tpu.memory_space<vmem>>, %arg9: memref<128x32xf32, #tpu.memory_space<vmem>>, %arg10: memref<1x32xf32, #tpu.memory_space<vmem>>, %arg11: memref<1x16x32xf32, #tpu.memory_space<vmem>>, %arg12: memref<4x16x8xf32, #tpu.memory_space<vmem>>, %arg13: memref<4x16x8xf32, #tpu.memory_space<vmem>>, %arg14: memref<4x16x8xf32, #tpu.memory_space<vmem>>, %arg15: memref<16x32xf32, #tpu.memory_space<vmem>>) attributes {dimension_semantics = [#tpu.dimension_semantics<parallel>], iteration_bounds = array<i64: 2>, scalar_prefetch = 0 : i64, scratch_operands = 4 : i64, tpu.core_type = #tpu.core_type<tc>, window_params = [{transform_indices = @transform_0, window_bounds = array<i64: 1, 16, 32>}, {transform_indices = @transform_1, window_bounds = array<i64: 1, 6, 32>}, {pipeline_mode = #tpu.pipeline_mode<synchronous>, transform_indices = @transform_2, window_bounds = array<i64: 32, 96>}, {pipeline_mode = #tpu.pipeline_mode<synchronous>, transform_indices = @transform_3, window_bounds = array<i64: 1, 96>}, {pipeline_mode = #tpu.pipeline_mode<synchronous>, transform_indices = @transform_4, window_bounds = array<i64: 32, 32>}, {pipeline_mode = #tpu.pipeline_mode<synchronous>, transform_indices = @transform_5, window_bounds = array<i64: 1, 32>}, {pipeline_mode = #tpu.pipeline_mode<synchronous>, transform_indices = @transform_6, window_bounds = array<i64: 32, 128>}, {pipeline_mode = #tpu.pipeline_mode<synchronous>, transform_indices = @transform_7, window_bounds = array<i64: 1, 128>}, {pipeline_mode = #tpu.pipeline_mode<synchronous>, transform_indices = @transform_8, window_bounds = array<i64: 128, 32>}, {pipeline_mode = #tpu.pipeline_mode<synchronous>, transform_indices = @transform_9, window_bounds = array<i64: 1, 32>}, {transform_indices = @transform_10, window_bounds = array<i64: 1, 16, 32>}]} {
    %c0 = arith.constant 0 : index
    %c0_0 = arith.constant 0 : index
    %c0_1 = arith.constant 0 : index
    %0 = vector.load %arg1[%c0, %c0_0, %c0_1] : memref<1x16x32xf32, #tpu.memory_space<vmem>>, vector<1x16x32xf32>
    %1 = vector.shape_cast %0 : vector<1x16x32xf32> to vector<16x32xf32>
    %c0_2 = arith.constant 0 : index
    %c0_3 = arith.constant 0 : index
    %c0_4 = arith.constant 0 : index
    %2 = vector.load %arg2[%c0_2, %c0_3, %c0_4] : memref<1x6x32xf32, #tpu.memory_space<vmem>>, vector<1x6x32xf32>
    %3 = vector.shape_cast %2 : vector<1x6x32xf32> to vector<6x32xf32>
    %4 = vector.extract_strided_slice %3 {offsets = [0, 0], sizes = [1, 32], strides = [1, 1]} : vector<6x32xf32> to vector<1x32xf32>
    %5 = vector.extract_strided_slice %3 {offsets = [1, 0], sizes = [1, 32], strides = [1, 1]} : vector<6x32xf32> to vector<1x32xf32>
    %6 = vector.extract_strided_slice %3 {offsets = [2, 0], sizes = [1, 32], strides = [1, 1]} : vector<6x32xf32> to vector<1x32xf32>
    %7 = vector.extract_strided_slice %3 {offsets = [3, 0], sizes = [1, 32], strides = [1, 1]} : vector<6x32xf32> to vector<1x32xf32>
    %8 = vector.extract_strided_slice %3 {offsets = [4, 0], sizes = [1, 32], strides = [1, 1]} : vector<6x32xf32> to vector<1x32xf32>
    %9 = vector.extract_strided_slice %3 {offsets = [5, 0], sizes = [1, 32], strides = [1, 1]} : vector<6x32xf32> to vector<1x32xf32>
    %cst = arith.constant dense<0.000000e+00> : vector<16xf32>
    %10 = vector.multi_reduction <add>, %1, %cst [1] : vector<16x32xf32> to vector<16xf32>
    %11 = vector.shape_cast %10 : vector<16xf32> to vector<16x1xf32>
    %cst_5 = arith.constant 3.200000e+01 : f32
    %12 = vector.broadcast %cst_5 : f32 to vector<16x1xf32>
    %13 = arith.divf %11, %12 : vector<16x1xf32>
    %14 = vector.broadcast %13 : vector<16x1xf32> to vector<16x32xf32>
    %15 = arith.subf %1, %14 : vector<16x32xf32>
    %16 = arith.mulf %15, %15 : vector<16x32xf32>
    %cst_6 = arith.constant dense<0.000000e+00> : vector<16xf32>
    %17 = vector.multi_reduction <add>, %16, %cst_6 [1] : vector<16x32xf32> to vector<16xf32>
    %18 = vector.shape_cast %17 : vector<16xf32> to vector<16x1xf32>
    %cst_7 = arith.constant 3.200000e+01 : f32
    %19 = vector.broadcast %cst_7 : f32 to vector<16x1xf32>
    %20 = arith.divf %18, %19 : vector<16x1xf32>
    %21 = vector.broadcast %13 : vector<16x1xf32> to vector<16x32xf32>
    %22 = arith.subf %1, %21 : vector<16x32xf32>
    %cst_8 = arith.constant 9.99999997E-7 : f32
    %23 = vector.broadcast %cst_8 : f32 to vector<16x1xf32>
    %24 = arith.addf %20, %23 : vector<16x1xf32>
    %25 = math.rsqrt %24 : vector<16x1xf32>
    %26 = vector.broadcast %25 : vector<16x1xf32> to vector<16x32xf32>
    %27 = arith.mulf %22, %26 : vector<16x32xf32>
    %cst_9 = arith.constant 1.000000e+00 : f32
    %28 = vector.broadcast %cst_9 : f32 to vector<1x32xf32>
    %29 = arith.addf %28, %5 : vector<1x32xf32>
    %30 = vector.broadcast %29 : vector<1x32xf32> to vector<16x32xf32>
    %31 = arith.mulf %27, %30 : vector<16x32xf32>
    %32 = vector.broadcast %4 : vector<1x32xf32> to vector<16x32xf32>
    %33 = arith.addf %31, %32 : vector<16x32xf32>
    %c0_10 = arith.constant 0 : index
    %c0_11 = arith.constant 0 : index
    %34 = vector.load %arg3[%c0_10, %c0_11] : memref<32x96xf32, #tpu.memory_space<vmem>>, vector<32x96xf32>
    %cst_12 = arith.constant dense<0.000000e+00> : vector<16x96xf32>
    %35 = tpu.matmul %33, %34, %cst_12 {dimension_numbers = #tpu.dot_dimension_numbers<[1], [0], [0], [1], [0, 0, 1, 1], [], []>} : vector<16x32xf32>, vector<32x96xf32>, vector<16x96xf32> -> vector<16x96xf32>
    %c0_13 = arith.constant 0 : index
    %c0_14 = arith.constant 0 : index
    %36 = vector.load %arg4[%c0_13, %c0_14] : memref<1x96xf32, #tpu.memory_space<vmem>>, vector<1x96xf32>
    %37 = vector.broadcast %36 : vector<1x96xf32> to vector<16x96xf32>
    %38 = arith.addf %35, %37 : vector<16x96xf32>
    %39 = vector.extract_strided_slice %38 {offsets = [0, 0], sizes = [16, 8], strides = [1, 1]} : vector<16x96xf32> to vector<16x8xf32>
    %c0_15 = arith.constant 0 : index
    %c0_16 = arith.constant 0 : index
    %c0_17 = arith.constant 0 : index
    %40 = vector.load %arg12[%c0_15, %c0_16, %c0_17] : memref<4x16x8xf32, #tpu.memory_space<vmem>>, vector<1x16x8xf32>
    %41 = vector.shape_cast %40 : vector<1x16x8xf32> to vector<16x8xf32>
    %42 = vector.shape_cast %39 : vector<16x8xf32> to vector<1x16x8xf32>
    tpu.vector_store %arg12[%c0_15, %c0_16, %c0_17], %42 {strides = array<i32>} : memref<4x16x8xf32, #tpu.memory_space<vmem>>, vector<1x16x8xf32>,
    %43 = vector.extract_strided_slice %38 {offsets = [0, 32], sizes = [16, 8], strides = [1, 1]} : vector<16x96xf32> to vector<16x8xf32>
    %c0_18 = arith.constant 0 : index
    %c0_19 = arith.constant 0 : index
    %c0_20 = arith.constant 0 : index
    %44 = vector.load %arg13[%c0_18, %c0_19, %c0_20] : memref<4x16x8xf32, #tpu.memory_space<vmem>>, vector<1x16x8xf32>
    %45 = vector.shape_cast %44 : vector<1x16x8xf32> to vector<16x8xf32>
    %46 = vector.shape_cast %43 : vector<16x8xf32> to vector<1x16x8xf32>
    tpu.vector_store %arg13[%c0_18, %c0_19, %c0_20], %46 {strides = array<i32>} : memref<4x16x8xf32, #tpu.memory_space<vmem>>, vector<1x16x8xf32>,
    %47 = vector.extract_strided_slice %38 {offsets = [0, 64], sizes = [16, 8], strides = [1, 1]} : vector<16x96xf32> to vector<16x8xf32>
    %c0_21 = arith.constant 0 : index
    %c0_22 = arith.constant 0 : index
    %c0_23 = arith.constant 0 : index
    %48 = vector.load %arg14[%c0_21, %c0_22, %c0_23] : memref<4x16x8xf32, #tpu.memory_space<vmem>>, vector<1x16x8xf32>
    %49 = vector.shape_cast %48 : vector<1x16x8xf32> to vector<16x8xf32>
    %50 = vector.shape_cast %47 : vector<16x8xf32> to vector<1x16x8xf32>
    tpu.vector_store %arg14[%c0_21, %c0_22, %c0_23], %50 {strides = array<i32>} : memref<4x16x8xf32, #tpu.memory_space<vmem>>, vector<1x16x8xf32>,
    %51 = vector.extract_strided_slice %38 {offsets = [0, 8], sizes = [16, 8], strides = [1, 1]} : vector<16x96xf32> to vector<16x8xf32>
    %c1 = arith.constant 1 : index
    %c0_24 = arith.constant 0 : index
    %c0_25 = arith.constant 0 : index
    %52 = vector.load %arg12[%c1, %c0_24, %c0_25] : memref<4x16x8xf32, #tpu.memory_space<vmem>>, vector<1x16x8xf32>
    %53 = vector.shape_cast %52 : vector<1x16x8xf32> to vector<16x8xf32>
    %54 = vector.shape_cast %51 : vector<16x8xf32> to vector<1x16x8xf32>
    tpu.vector_store %arg12[%c1, %c0_24, %c0_25], %54 {strides = array<i32>} : memref<4x16x8xf32, #tpu.memory_space<vmem>>, vector<1x16x8xf32>,
    %55 = vector.extract_strided_slice %38 {offsets = [0, 40], sizes = [16, 8], strides = [1, 1]} : vector<16x96xf32> to vector<16x8xf32>
    %c1_26 = arith.constant 1 : index
    %c0_27 = arith.constant 0 : index
    %c0_28 = arith.constant 0 : index
    %56 = vector.load %arg13[%c1_26, %c0_27, %c0_28] : memref<4x16x8xf32, #tpu.memory_space<vmem>>, vector<1x16x8xf32>
    %57 = vector.shape_cast %56 : vector<1x16x8xf32> to vector<16x8xf32>
    %58 = vector.shape_cast %55 : vector<16x8xf32> to vector<1x16x8xf32>
    tpu.vector_store %arg13[%c1_26, %c0_27, %c0_28], %58 {strides = array<i32>} : memref<4x16x8xf32, #tpu.memory_space<vmem>>, vector<1x16x8xf32>,
    %59 = vector.extract_strided_slice %38 {offsets = [0, 72], sizes = [16, 8], strides = [1, 1]} : vector<16x96xf32> to vector<16x8xf32>
    %c1_29 = arith.constant 1 : index
    %c0_30 = arith.constant 0 : index
    %c0_31 = arith.constant 0 : index
    %60 = vector.load %arg14[%c1_29, %c0_30, %c0_31] : memref<4x16x8xf32, #tpu.memory_space<vmem>>, vector<1x16x8xf32>
    %61 = vector.shape_cast %60 : vector<1x16x8xf32> to vector<16x8xf32>
    %62 = vector.shape_cast %59 : vector<16x8xf32> to vector<1x16x8xf32>
    tpu.vector_store %arg14[%c1_29, %c0_30, %c0_31], %62 {strides = array<i32>} : memref<4x16x8xf32, #tpu.memory_space<vmem>>, vector<1x16x8xf32>,
    %63 = vector.extract_strided_slice %38 {offsets = [0, 16], sizes = [16, 8], strides = [1, 1]} : vector<16x96xf32> to vector<16x8xf32>
    %c2 = arith.constant 2 : index
    %c0_32 = arith.constant 0 : index
    %c0_33 = arith.constant 0 : index
    %64 = vector.load %arg12[%c2, %c0_32, %c0_33] : memref<4x16x8xf32, #tpu.memory_space<vmem>>, vector<1x16x8xf32>
    %65 = vector.shape_cast %64 : vector<1x16x8xf32> to vector<16x8xf32>
    %66 = vector.shape_cast %63 : vector<16x8xf32> to vector<1x16x8xf32>
    tpu.vector_store %arg12[%c2, %c0_32, %c0_33], %66 {strides = array<i32>} : memref<4x16x8xf32, #tpu.memory_space<vmem>>, vector<1x16x8xf32>,
    %67 = vector.extract_strided_slice %38 {offsets = [0, 48], sizes = [16, 8], strides = [1, 1]} : vector<16x96xf32> to vector<16x8xf32>
    %c2_34 = arith.constant 2 : index
    %c0_35 = arith.constant 0 : index
    %c0_36 = arith.constant 0 : index
    %68 = vector.load %arg13[%c2_34, %c0_35, %c0_36] : memref<4x16x8xf32, #tpu.memory_space<vmem>>, vector<1x16x8xf32>
    %69 = vector.shape_cast %68 : vector<1x16x8xf32> to vector<16x8xf32>
    %70 = vector.shape_cast %67 : vector<16x8xf32> to vector<1x16x8xf32>
    tpu.vector_store %arg13[%c2_34, %c0_35, %c0_36], %70 {strides = array<i32>} : memref<4x16x8xf32, #tpu.memory_space<vmem>>, vector<1x16x8xf32>,
    %71 = vector.extract_strided_slice %38 {offsets = [0, 80], sizes = [16, 8], strides = [1, 1]} : vector<16x96xf32> to vector<16x8xf32>
    %c2_37 = arith.constant 2 : index
    %c0_38 = arith.constant 0 : index
    %c0_39 = arith.constant 0 : index
    %72 = vector.load %arg14[%c2_37, %c0_38, %c0_39] : memref<4x16x8xf32, #tpu.memory_space<vmem>>, vector<1x16x8xf32>
    %73 = vector.shape_cast %72 : vector<1x16x8xf32> to vector<16x8xf32>
    %74 = vector.shape_cast %71 : vector<16x8xf32> to vector<1x16x8xf32>
    tpu.vector_store %arg14[%c2_37, %c0_38, %c0_39], %74 {strides = array<i32>} : memref<4x16x8xf32, #tpu.memory_space<vmem>>, vector<1x16x8xf32>,
    %75 = vector.extract_strided_slice %38 {offsets = [0, 24], sizes = [16, 8], strides = [1, 1]} : vector<16x96xf32> to vector<16x8xf32>
    %c3 = arith.constant 3 : index
    %c0_40 = arith.constant 0 : index
    %c0_41 = arith.constant 0 : index
    %76 = vector.load %arg12[%c3, %c0_40, %c0_41] : memref<4x16x8xf32, #tpu.memory_space<vmem>>, vector<1x16x8xf32>
    %77 = vector.shape_cast %76 : vector<1x16x8xf32> to vector<16x8xf32>
    %78 = vector.shape_cast %75 : vector<16x8xf32> to vector<1x16x8xf32>
    tpu.vector_store %arg12[%c3, %c0_40, %c0_41], %78 {strides = array<i32>} : memref<4x16x8xf32, #tpu.memory_space<vmem>>, vector<1x16x8xf32>,
    %79 = vector.extract_strided_slice %38 {offsets = [0, 56], sizes = [16, 8], strides = [1, 1]} : vector<16x96xf32> to vector<16x8xf32>
    %c3_42 = arith.constant 3 : index
    %c0_43 = arith.constant 0 : index
    %c0_44 = arith.constant 0 : index
    %80 = vector.load %arg13[%c3_42, %c0_43, %c0_44] : memref<4x16x8xf32, #tpu.memory_space<vmem>>, vector<1x16x8xf32>
    %81 = vector.shape_cast %80 : vector<1x16x8xf32> to vector<16x8xf32>
    %82 = vector.shape_cast %79 : vector<16x8xf32> to vector<1x16x8xf32>
    tpu.vector_store %arg13[%c3_42, %c0_43, %c0_44], %82 {strides = array<i32>} : memref<4x16x8xf32, #tpu.memory_space<vmem>>, vector<1x16x8xf32>,
    %83 = vector.extract_strided_slice %38 {offsets = [0, 88], sizes = [16, 8], strides = [1, 1]} : vector<16x96xf32> to vector<16x8xf32>
    %c3_45 = arith.constant 3 : index
    %c0_46 = arith.constant 0 : index
    %c0_47 = arith.constant 0 : index
    %84 = vector.load %arg14[%c3_45, %c0_46, %c0_47] : memref<4x16x8xf32, #tpu.memory_space<vmem>>, vector<1x16x8xf32>
    %85 = vector.shape_cast %84 : vector<1x16x8xf32> to vector<16x8xf32>
    %86 = vector.shape_cast %83 : vector<16x8xf32> to vector<1x16x8xf32>
    tpu.vector_store %arg14[%c3_45, %c0_46, %c0_47], %86 {strides = array<i32>} : memref<4x16x8xf32, #tpu.memory_space<vmem>>, vector<1x16x8xf32>,
    %c0_48 = arith.constant 0 : index
    %c0_49 = arith.constant 0 : index
    %c0_50 = arith.constant 0 : index
    %87 = vector.load %arg12[%c0_48, %c0_49, %c0_50] : memref<4x16x8xf32, #tpu.memory_space<vmem>>, vector<4x16x8xf32>
    %c0_51 = arith.constant 0 : index
    %c0_52 = arith.constant 0 : index
    %c0_53 = arith.constant 0 : index
    %88 = vector.load %arg13[%c0_51, %c0_52, %c0_53] : memref<4x16x8xf32, #tpu.memory_space<vmem>>, vector<4x16x8xf32>
    %c0_54 = arith.constant 0 : index
    %c0_55 = arith.constant 0 : index
    %c0_56 = arith.constant 0 : index
    %89 = vector.load %arg14[%c0_54, %c0_55, %c0_56] : memref<4x16x8xf32, #tpu.memory_space<vmem>>, vector<4x16x8xf32>
    "tpu.trace_start"() <{level = 10 : i32, message = "hnd,hmd->hnm"}> : () -> ()
    %cst_57 = arith.constant dense<0.000000e+00> : vector<4x16x16xf32>
    %90 = tpu.matmul %87, %88, %cst_57 {dimension_numbers = #tpu.dot_dimension_numbers<[2], [2], [1], [1], [0, 0, 0, 1, 1, 1], [0], [0]>} : vector<4x16x8xf32>, vector<4x16x8xf32>, vector<4x16x16xf32> -> vector<4x16x16xf32>
    "tpu.trace_stop"() : () -> ()
    %cst_58 = arith.constant dense<0xFF800000> : vector<4x16xf32>
    %91 = vector.multi_reduction <maximumf>, %90, %cst_58 [2] : vector<4x16x16xf32> to vector<4x16xf32>
    %92 = vector.shape_cast %91 : vector<4x16xf32> to vector<4x16x1xf32>
    %93 = vector.broadcast %92 : vector<4x16x1xf32> to vector<4x16x16xf32>
    %94 = arith.subf %90, %93 : vector<4x16x16xf32>
    %95 = math.exp %94 : vector<4x16x16xf32>
    %cst_59 = arith.constant dense<0.000000e+00> : vector<4x16xf32>
    %96 = vector.multi_reduction <add>, %95, %cst_59 [2] : vector<4x16x16xf32> to vector<4x16xf32>
    %97 = vector.shape_cast %96 : vector<4x16xf32> to vector<4x16x1xf32>
    %98 = tpu.reciprocal %97 {approx = true} : vector<4x16x1xf32> -> vector<4x16x1xf32>
    %99 = vector.broadcast %98 : vector<4x16x1xf32> to vector<4x16x16xf32>
    %100 = arith.mulf %95, %99 : vector<4x16x16xf32>
    "tpu.trace_start"() <{level = 10 : i32, message = "hnm,hmd->hnd"}> : () -> ()
    %cst_60 = arith.constant dense<0.000000e+00> : vector<4x16x8xf32>
    %101 = tpu.matmul %100, %89, %cst_60 {dimension_numbers = #tpu.dot_dimension_numbers<[2], [1], [1], [2], [0, 0, 0, 1, 1, 2], [0], [0]>} : vector<4x16x16xf32>, vector<4x16x8xf32>, vector<4x16x8xf32> -> vector<4x16x8xf32>
    "tpu.trace_stop"() : () -> ()
    %102 = vector.extract_strided_slice %101 {offsets = [0, 0, 0], sizes = [1, 16, 8], strides = [1, 1, 1]} : vector<4x16x8xf32> to vector<1x16x8xf32>
    %103 = vector.shape_cast %102 : vector<1x16x8xf32> to vector<16x8xf32>
    %c0_61 = arith.constant 0 : index
    %c0_62 = arith.constant 0 : index
    %104 = vector.load %arg15[%c0_61, %c0_62] : memref<16x32xf32, #tpu.memory_space<vmem>>, vector<16x8xf32>
    tpu.vector_store %arg15[%c0_61, %c0_62], %103 {strides = array<i32>} : memref<16x32xf32, #tpu.memory_space<vmem>>, vector<16x8xf32>,
    %105 = vector.extract_strided_slice %101 {offsets = [1, 0, 0], sizes = [1, 16, 8], strides = [1, 1, 1]} : vector<4x16x8xf32> to vector<1x16x8xf32>
    %106 = vector.shape_cast %105 : vector<1x16x8xf32> to vector<16x8xf32>
    %c0_63 = arith.constant 0 : index
    %c8 = arith.constant 8 : index
    %107 = vector.load %arg15[%c0_63, %c8] : memref<16x32xf32, #tpu.memory_space<vmem>>, vector<16x8xf32>
    tpu.vector_store %arg15[%c0_63, %c8], %106 {strides = array<i32>} : memref<16x32xf32, #tpu.memory_space<vmem>>, vector<16x8xf32>,
    %108 = vector.extract_strided_slice %101 {offsets = [2, 0, 0], sizes = [1, 16, 8], strides = [1, 1, 1]} : vector<4x16x8xf32> to vector<1x16x8xf32>
    %109 = vector.shape_cast %108 : vector<1x16x8xf32> to vector<16x8xf32>
    %c0_64 = arith.constant 0 : index
    %c16 = arith.constant 16 : index
    %110 = vector.load %arg15[%c0_64, %c16] : memref<16x32xf32, #tpu.memory_space<vmem>>, vector<16x8xf32>
    tpu.vector_store %arg15[%c0_64, %c16], %109 {strides = array<i32>} : memref<16x32xf32, #tpu.memory_space<vmem>>, vector<16x8xf32>,
    %111 = vector.extract_strided_slice %101 {offsets = [3, 0, 0], sizes = [1, 16, 8], strides = [1, 1, 1]} : vector<4x16x8xf32> to vector<1x16x8xf32>
    %112 = vector.shape_cast %111 : vector<1x16x8xf32> to vector<16x8xf32>
    %c0_65 = arith.constant 0 : index
    %c24 = arith.constant 24 : index
    %113 = vector.load %arg15[%c0_65, %c24] : memref<16x32xf32, #tpu.memory_space<vmem>>, vector<16x8xf32>
    tpu.vector_store %arg15[%c0_65, %c24], %112 {strides = array<i32>} : memref<16x32xf32, #tpu.memory_space<vmem>>, vector<16x8xf32>,
    %c0_66 = arith.constant 0 : index
    %c0_67 = arith.constant 0 : index
    %114 = vector.load %arg15[%c0_66, %c0_67] : memref<16x32xf32, #tpu.memory_space<vmem>>, vector<16x32xf32>
    %c0_68 = arith.constant 0 : index
    %c0_69 = arith.constant 0 : index
    %115 = vector.load %arg5[%c0_68, %c0_69] : memref<32x32xf32, #tpu.memory_space<vmem>>, vector<32x32xf32>
    %cst_70 = arith.constant dense<0.000000e+00> : vector<16x32xf32>
    %116 = tpu.matmul %114, %115, %cst_70 {dimension_numbers = #tpu.dot_dimension_numbers<[1], [0], [0], [1], [0, 0, 1, 1], [], []>} : vector<16x32xf32>, vector<32x32xf32>, vector<16x32xf32> -> vector<16x32xf32>
    %c0_71 = arith.constant 0 : index
    %c0_72 = arith.constant 0 : index
    %117 = vector.load %arg6[%c0_71, %c0_72] : memref<1x32xf32, #tpu.memory_space<vmem>>, vector<1x32xf32>
    %118 = vector.broadcast %117 : vector<1x32xf32> to vector<16x32xf32>
    %119 = arith.addf %116, %118 : vector<16x32xf32>
    %120 = vector.broadcast %6 : vector<1x32xf32> to vector<16x32xf32>
    %121 = arith.mulf %120, %119 : vector<16x32xf32>
    %122 = arith.addf %1, %121 : vector<16x32xf32>
    %cst_73 = arith.constant dense<0.000000e+00> : vector<16xf32>
    %123 = vector.multi_reduction <add>, %122, %cst_73 [1] : vector<16x32xf32> to vector<16xf32>
    %124 = vector.shape_cast %123 : vector<16xf32> to vector<16x1xf32>
    %cst_74 = arith.constant 3.200000e+01 : f32
    %125 = vector.broadcast %cst_74 : f32 to vector<16x1xf32>
    %126 = arith.divf %124, %125 : vector<16x1xf32>
    %127 = vector.broadcast %126 : vector<16x1xf32> to vector<16x32xf32>
    %128 = arith.subf %122, %127 : vector<16x32xf32>
    %129 = arith.mulf %128, %128 : vector<16x32xf32>
    %cst_75 = arith.constant dense<0.000000e+00> : vector<16xf32>
    %130 = vector.multi_reduction <add>, %129, %cst_75 [1] : vector<16x32xf32> to vector<16xf32>
    %131 = vector.shape_cast %130 : vector<16xf32> to vector<16x1xf32>
    %cst_76 = arith.constant 3.200000e+01 : f32
    %132 = vector.broadcast %cst_76 : f32 to vector<16x1xf32>
    %133 = arith.divf %131, %132 : vector<16x1xf32>
    %134 = vector.broadcast %126 : vector<16x1xf32> to vector<16x32xf32>
    %135 = arith.subf %122, %134 : vector<16x32xf32>
    %cst_77 = arith.constant 9.99999997E-7 : f32
    %136 = vector.broadcast %cst_77 : f32 to vector<16x1xf32>
    %137 = arith.addf %133, %136 : vector<16x1xf32>
    %138 = math.rsqrt %137 : vector<16x1xf32>
    %139 = vector.broadcast %138 : vector<16x1xf32> to vector<16x32xf32>
    %140 = arith.mulf %135, %139 : vector<16x32xf32>
    %cst_78 = arith.constant 1.000000e+00 : f32
    %141 = vector.broadcast %cst_78 : f32 to vector<1x32xf32>
    %142 = arith.addf %141, %8 : vector<1x32xf32>
    %143 = vector.broadcast %142 : vector<1x32xf32> to vector<16x32xf32>
    %144 = arith.mulf %140, %143 : vector<16x32xf32>
    %145 = vector.broadcast %7 : vector<1x32xf32> to vector<16x32xf32>
    %146 = arith.addf %144, %145 : vector<16x32xf32>
    %c0_79 = arith.constant 0 : index
    %c0_80 = arith.constant 0 : index
    %147 = vector.load %arg7[%c0_79, %c0_80] : memref<32x128xf32, #tpu.memory_space<vmem>>, vector<32x128xf32>
    %cst_81 = arith.constant dense<0.000000e+00> : vector<16x128xf32>
    %148 = tpu.matmul %146, %147, %cst_81 {dimension_numbers = #tpu.dot_dimension_numbers<[1], [0], [0], [1], [0, 0, 1, 1], [], []>} : vector<16x32xf32>, vector<32x128xf32>, vector<16x128xf32> -> vector<16x128xf32>
    %c0_82 = arith.constant 0 : index
    %c0_83 = arith.constant 0 : index
    %149 = vector.load %arg8[%c0_82, %c0_83] : memref<1x128xf32, #tpu.memory_space<vmem>>, vector<1x128xf32>
    %150 = vector.broadcast %149 : vector<1x128xf32> to vector<16x128xf32>
    %151 = arith.addf %148, %150 : vector<16x128xf32>
    %cst_84 = arith.constant 5.000000e-01 : f32
    %152 = vector.broadcast %cst_84 : f32 to vector<16x128xf32>
    %153 = arith.mulf %152, %151 : vector<16x128xf32>
    %cst_85 = arith.constant 4.471500e-02 : f32
    %154 = vector.broadcast %cst_85 : f32 to vector<16x128xf32>
    %155 = arith.mulf %154, %151 : vector<16x128xf32>
    %156 = arith.mulf %155, %151 : vector<16x128xf32>
    %157 = arith.mulf %156, %151 : vector<16x128xf32>
    %158 = arith.addf %151, %157 : vector<16x128xf32>
    %cst_86 = arith.constant 0.797884583 : f32
    %159 = vector.broadcast %cst_86 : f32 to vector<16x128xf32>
    %160 = arith.mulf %159, %158 : vector<16x128xf32>
    %161 = math.tanh %160 : vector<16x128xf32>
    %cst_87 = arith.constant 1.000000e+00 : f32
    %162 = vector.broadcast %cst_87 : f32 to vector<16x128xf32>
    %163 = arith.addf %162, %161 : vector<16x128xf32>
    %164 = arith.mulf %153, %163 : vector<16x128xf32>
    %c0_88 = arith.constant 0 : index
    %c0_89 = arith.constant 0 : index
    %165 = vector.load %arg9[%c0_88, %c0_89] : memref<128x32xf32, #tpu.memory_space<vmem>>, vector<128x32xf32>
    %cst_90 = arith.constant dense<0.000000e+00> : vector<16x32xf32>
    %166 = tpu.matmul %164, %165, %cst_90 {dimension_numbers = #tpu.dot_dimension_numbers<[1], [0], [0], [1], [0, 0, 1, 1], [], []>} : vector<16x128xf32>, vector<128x32xf32>, vector<16x32xf32> -> vector<16x32xf32>
    %c0_91 = arith.constant 0 : index
    %c0_92 = arith.constant 0 : index
    %167 = vector.load %arg10[%c0_91, %c0_92] : memref<1x32xf32, #tpu.memory_space<vmem>>, vector<1x32xf32>
    %168 = vector.broadcast %167 : vector<1x32xf32> to vector<16x32xf32>
    %169 = arith.addf %166, %168 : vector<16x32xf32>
    %170 = vector.broadcast %9 : vector<1x32xf32> to vector<16x32xf32>
    %171 = arith.mulf %170, %169 : vector<16x32xf32>
    %172 = arith.addf %122, %171 : vector<16x32xf32>
    %c0_93 = arith.constant 0 : index
    %c0_94 = arith.constant 0 : index
    %c0_95 = arith.constant 0 : index
    %173 = vector.load %arg11[%c0_93, %c0_94, %c0_95] : memref<1x16x32xf32, #tpu.memory_space<vmem>>, vector<1x16x32xf32>
    %174 = vector.shape_cast %173 : vector<1x16x32xf32> to vector<16x32xf32>
    %175 = vector.shape_cast %172 : vector<16x32xf32> to vector<1x16x32xf32>
    tpu.vector_store %arg11[%c0_93, %c0_94, %c0_95], %175 {strides = array<i32>} : memref<1x16x32xf32, #tpu.memory_space<vmem>>, vector<1x16x32xf32>,
    return
  }
  func.func @transform_0(%arg0: i32) -> (i32, i32, i32) {
    %c0_i32 = arith.constant 0 : i32
    %c0_i32_0 = arith.constant 0 : i32
    %c0_i32_1 = arith.constant 0 : i32
    return %arg0, %c0_i32, %c0_i32_0 : i32, i32, i32
  }
  func.func @transform_1(%arg0: i32) -> (i32, i32, i32) {
    %c0_i32 = arith.constant 0 : i32
    %c0_i32_0 = arith.constant 0 : i32
    %c0_i32_1 = arith.constant 0 : i32
    return %arg0, %c0_i32, %c0_i32_0 : i32, i32, i32
  }
  func.func @transform_2(%arg0: i32) -> (i32, i32) {
    %c0_i32 = arith.constant 0 : i32
    %c0_i32_0 = arith.constant 0 : i32
    %c0_i32_1 = arith.constant 0 : i32
    return %c0_i32, %c0_i32_0 : i32, i32
  }
  func.func @transform_3(%arg0: i32) -> (i32, i32) {
    %c0_i32 = arith.constant 0 : i32
    %c0_i32_0 = arith.constant 0 : i32
    %c0_i32_1 = arith.constant 0 : i32
    return %c0_i32, %c0_i32_0 : i32, i32
  }
  func.func @transform_4(%arg0: i32) -> (i32, i32) {
    %c0_i32 = arith.constant 0 : i32
    %c0_i32_0 = arith.constant 0 : i32
    %c0_i32_1 = arith.constant 0 : i32
    return %c0_i32, %c0_i32_0 : i32, i32
  }
  func.func @transform_5(%arg0: i32) -> (i32, i32) {
    %c0_i32 = arith.constant 0 : i32
    %c0_i32_0 = arith.constant 0 : i32
    %c0_i32_1 = arith.constant 0 : i32
    return %c0_i32, %c0_i32_0 : i32, i32
  }
  func.func @transform_6(%arg0: i32) -> (i32, i32) {
    %c0_i32 = arith.constant 0 : i32
    %c0_i32_0 = arith.constant 0 : i32
    %c0_i32_1 = arith.constant 0 : i32
    return %c0_i32, %c0_i32_0 : i32, i32
  }
  func.func @transform_7(%arg0: i32) -> (i32, i32) {
    %c0_i32 = arith.constant 0 : i32
    %c0_i32_0 = arith.constant 0 : i32
    %c0_i32_1 = arith.constant 0 : i32
    return %c0_i32, %c0_i32_0 : i32, i32
  }
  func.func @transform_8(%arg0: i32) -> (i32, i32) {
    %c0_i32 = arith.constant 0 : i32
    %c0_i32_0 = arith.constant 0 : i32
    %c0_i32_1 = arith.constant 0 : i32
    return %c0_i32, %c0_i32_0 : i32, i32
  }
  func.func @transform_9(%arg0: i32) -> (i32, i32) {
    %c0_i32 = arith.constant 0 : i32
    %c0_i32_0 = arith.constant 0 : i32
    %c0_i32_1 = arith.constant 0 : i32
    return %c0_i32, %c0_i32_0 : i32, i32
  }
  func.func @transform_10(%arg0: i32) -> (i32, i32, i32) {
    %c0_i32 = arith.constant 0 : i32
    %c0_i32_0 = arith.constant 0 : i32
    %c0_i32_1 = arith.constant 0 : i32
    return %arg0, %c0_i32, %c0_i32_0 : i32, i32, i32
  }
}

</mosaic_0001>

<bundles_post_ra>
// kernel: tpu_custom_call.1
= control target key start
LH: loop header
LB: loop body
LE: loop exit
PB: predicated region body
PF: predicated region fallthrough
CT: control target
= control target key end

     0   :  { %15 = vsyncpa [#allocation7], 0  ;;  %s2732_s0 = inlined_call_operand.vmem [shape: f32[2,16,32], index: 0, kind: input, shape index: {}]   ;;  %s2733_s1 = inlined_call_operand.vmem [shape: f32[2,6,32], index: 1, kind: input, shape index: {}]   ;;  %s2734_s2 = inlined_call_operand.vmem [shape: f32[32,96], index: 2, kind: input, shape index: {}]   ;;  %s2735_s3 = inlined_call_operand.vmem [shape: f32[1,96], index: 3, kind: input, shape index: {}]   ;;  %s2736_s4 = inlined_call_operand.vmem [shape: f32[32,32], index: 4, kind: input, shape index: {}]   ;;  %s2737_s5 = inlined_call_operand.vmem [shape: f32[1,32], index: 5, kind: input, shape index: {}]   ;;  %s2738_s6 = inlined_call_operand.vmem [shape: f32[32,128], index: 6, kind: input, shape index: {}]   ;;  %s2739_s7 = inlined_call_operand.vmem [shape: f32[1,128], index: 7, kind: input, shape index: {}]   ;;  %s2740_s8 = inlined_call_operand.vmem [shape: f32[128,32], index: 8, kind: input, shape index: {}]   ;;  %s2741_s9 = inlined_call_operand.vmem [shape: f32[1,32], index: 9, kind: input, shape index: {}]   ;;  %s2742_s10 = inlined_call_operand.hbm [shape: f32[2,16,32], index: 10, kind: output, shape index: {}]  }
   0x1   :  { %17 = vsyncpa [#allocation7 + $0x1], 0  ;;  %s2351_s13 = smov 0   ;;  %s2353_s14 = smov 0  }
   0x2   :  { %s2355_s15 = smov 0   ;;  %s2357_s16 = smov 0  }
   0x3 LB: > { %s2372_s17 = sadd.s32 4294967295, %s2278_s16   ;;  %s1879_s18 = sadd.s32 4294967294, %s2278_s16   ;;  %s2278_s16 = sphi %s2357_s16, %s2750_s16   ;;  %s2274_s15 = sphi %s2355_s15, %s2749_s15   ;;  %s2270_s14 = sphi %s2353_s14, %s2748_s14   ;;  %s2266_s13 = sphi %s2351_s13, %s2747_s13  }
   0x4   : > { %s2376_s19 = sadd.s32 1, %s2278_s16   ;;  %s250_s20 = sadd.s32 1, %s2274_s15 }
   0x5   : > { %s247_s21 = ssub.s32 %s2278_s16, %s2376_s19  ;;  %p260_p0 = scmp.ne.s32.totalorder %s2274_s15, %s2270_s14 }
   0x6   : > { %p248_p1 = scmp.eq.s32.totalorder %s247_s21, 0  ;;  %p261_p2 = scmp.eq.s32.totalorder %s2372_s17, 1 }
   0x7   : > { %p266_p3 = scmp.ne.s32.totalorder %s2270_s14, %s2266_s13  ;;  %p267_p4 = scmp.eq.s32.totalorder %s1879_s18, 1 }
   0x8   : > { %s2387_s22 = scalar_select %p248_p1, %s2274_s15, %s250_s20  }
   0x9   : > { %p2389_p5 = por %p261_p2, %p260_p0  ;;  %p2393_p6 = por %p267_p4, %p266_p3 }
   0xa   : > { %p1882_p7 = scmp.ge.s32.totalorder %s2278_s16, 1  ;;  %p324_p8 = scmp.lt.s32.totalorder %s2278_s16, 3 }
   0xc   : > { %p325_p9 = pnand %p1882_p7, %p324_p8 }
   0xd   : > { %p366_p10 = scmp.lt.s32.totalorder (!%p325_p9), %s2372_s17, 1  ;;  %s2280_s18 = smov (!%p325_p9), 88  }
   0xe   : > { %328 = sbr.rel (%p325_p9) target bundleno = 2475 (0x9ab), region = 60  ;;  %s2281_s20 = smov (!%p325_p9), 96  }
   0xf   : > { %s2282_s21 = smov (!%p325_p9), 120   ;;  %s2284_s27 = smov (!%p325_p9), 112  }
  0x10   : > { %s2287_s30 = smov (!%p325_p9), 64   ;;  %s2290_s12 = smov (!%p325_p9), 40  }
  0x13   : > { %s2401_s25 = scalar_select %p366_p10, %s2372_s17, 1  ;;  %vm378_vm0 = vcmask 261120   ;;  %v422_v14 = vld [vmem:[%s2734_s2 + $0x18] sm:$0xff]  ;;  %v421_v15 = vld [vmem:[%s2734_s2 + $0x10] sm:$0xff]  ;;  %v420_v16 = vld [vmem:[%s2734_s2 + $0x8] sm:$0xff]  ;;  %v407_v23 = vlaneseq  ;;  %vm511_vm1 = vcmask 64512  }
  0x14   : > { %1996 = vmatprep.subr.mxu1 %v422_v14  ;;  %v419_v17 = vld [vmem:[%s2734_s2] sm:$0xff]  ;;  %vm985_vm2 = vcmask 130048   ;;  %vm1408_vm3 = vcmask 130112   ;;  %vm1419_vm4 = vcmask 195712   ;;  %vm1430_vm5 = vcmask 261312  }
  0x15   : > { %s1926_s26 = sshll.u32 %s2401_s25, 4  ;;  %1997 = vmatpush3.msra.mxu1 %v422_v14  ;;  %s1886_s28 = sshll.u32 %s2401_s25, 3  ;;  %v2435_v25 = vshrl.u32 %v407_v23, 7  ;;  %v1887_v40 = vld [vmem:[%s2735_s3] ss:$0 sm:$0xff] }
  0x16   : > { %s370_s29 = scalar_lea.vmem %s2732_s0, %s1926_s26  ;;  %1998 = vmatprep.subr.mxu1 %v421_v15  ;;  %s374_s11 = scalar_lea.vmem %s2733_s1, %s1886_s28 }
  0x17   : > { %v2407_v0 = vld [vmem:[%s370_s29] sm:$0xff]  ;;  %v2409_v1 = vld [vmem:[%s370_s29 + $0x8] sm:$0xff]  ;;  %1999 = vmatpush3.msra.mxu1 %v421_v15  ;;  %v409_v28 = vsub.s32 1, %v2435_v25  ;;  %v415_v29 = vsub.s32 0, %v2435_v25  ;;  %s2283_s26 = smov 80   ;;  %s2285_s28 = smov 72  }
  0x18   : > { %v379_v2 = vsel %vm378_vm0, %v2407_v0, 0.0  ;;  %v382_v3 = vsel %vm378_vm0, %v2409_v1, 0.0  ;;  %2000 = vmatprep.subr.mxu1 %v420_v16  ;;  %v2437_v26 = vld [vmem:[%s374_s11] sm:$0x3f]  ;;  %s2286_s29 = smov 104   ;;  %s2288_s11 = smov 56  }
  0x19   : > { %380 = vadd.xlane.f32.xlu0 %v379_v2  ;;  %2001 = vmatpush3.msra.mxu1 %v420_v16  ;;  %v2440_v27 = vadd.f32 1.0, %v2437_v26  ;;  %v416_v33 = vrot.slane %v2437_v26, %v415_v29  ;;  %s2289_s25 = smov 48  }
  0x1a   : > { %2002 = vmatprep.subr.mxu1 %v419_v17 }
  0x1b   : > { %2003 = vmatpush3.msra.mxu1 %v419_v17  ;;  %v410_v30 = vrot.slane %v2440_v27, %v409_v28 }
  0x1d   : > { %383 = vadd.xlane.f32.xlu0 %v382_v3 }
  0xa2   : > { %v381_v4 = vpop.xlane.xlu0 %380 }
  0xa3   : > { %v386_v5 = vmul.f32 0.03125, %v381_v4 }
  0xa5   : > { %v388_v6 = vsub.f32 %v2407_v0, %v386_v5 }
  0xa6   : > { %v384_v7 = vpop.xlane.xlu0 %383 }
  0xa7   : > { %v387_v8 = vmul.f32 0.03125, %v384_v7  ;;  %v390_v9 = vmul.f32 %v388_v6, %v388_v6 }
  0xa9   : > { %v389_v10 = vsub.f32 %v2409_v1, %v387_v8  ;;  %v392_v11 = vsel %vm378_vm0, %v390_v9, 0.0 }
  0xaa   : > { %393 = vadd.xlane.f32.xlu1 %v392_v11 }
  0xab   : > { %v391_v12 = vmul.f32 %v389_v10, %v389_v10 }
  0xad   : > { %v395_v13 = vsel %vm378_vm0, %v391_v12, 0.0 }
  0xae   : > { %396 = vadd.xlane.f32.xlu1 %v395_v13 }
 0x133   : > { %v394_v18 = vpop.xlane.xlu1 %393 }
 0x134   : > { %v398_v19 = vmul.f32 0.03125, %v394_v18 }
 0x136   : > { %v400_v20 = vadd.f32 1e-06, %v398_v19 }
 0x137   : > { %v397_v21 = vpop.xlane.xlu1 %396 }
 0x138   : > { %2174 = vrsqrt.f32 %v400_v20  ;;  %v399_v22 = vmul.f32 0.03125, %v397_v21 }
 0x13a   : > { %v401_v24 = vadd.f32 1e-06, %v399_v22 }
 0x13c   : > { %2176 = vrsqrt.f32 %v401_v24 }
 0x145   : > { %v2175_v31 = vpop.eup %2174 }
 0x146   : > { %v404_v32 = vmul.f32 %v2175_v31, %v388_v6 }
 0x148   : > { %v411_v34 = vmul.f32 %v410_v30, %v404_v32 }
 0x149   : > { %v2177_v35 = vpop.eup %2176 }
 0x14a   : > { %v405_v36 = vmul.f32 %v2177_v35, %v389_v10  ;;  %v417_v37 = vadd.f32 %v416_v33, %v411_v34 }
 0x14c   : > { %v412_v38 = vmul.f32 %v410_v30, %v405_v36  ;;  %2004 = vmatprep.mubr.msk.f32.mxu1 %vm378_vm0, %v417_v37 }
 0x14e   : > { %v418_v39 = vadd.f32 %v416_v33, %v412_v38 }
 0x150   : > { %2005 = vmatmul.mubr.msk.f32.vlgmr.msra.gmra.mxu1 %vm378_vm0, %v418_v39 }
 0x210   : > { %v2006_v41 = vpop.f32.mrf.mxu1 }
 0x211   : > { %v2451_v42 = vadd.f32 %v2006_v41, %v1887_v40 }
 0x212   : > { %v502_v43 = vpop.f32.mrf.mxu1 }
 0x213   : > { %v2453_v44 = vadd.f32 %v1887_v40, %v502_v43  ;;  %543 = vrot.lane.b32.xlu1 %v2451_v42, %s2280_s18  ;;  %518 = vrot.lane.b32.xlu0 %v2451_v42, %s2281_s20  ;;  %513 = vst.msk [vmem:[#allocation2 + $0x8] sm:$0xff] %vm511_vm1, %v2451_v42 }
 0x215   : > { %512 = vst.msk [vmem:[#allocation2] sm:$0xff] %vm511_vm1, %v2453_v44 }
 0x217   : > { %534 = vrot.lane.b32.xlu0 %v2451_v42, %s2282_s21  ;;  %516 = vrot.lane.b32.xlu1 %v2453_v44, %s2281_s20 }
 0x21a   : > { %v614_v59 = vld [vmem:[#allocation2 + $0x8] sm:$0xff] }
 0x21b   : > { %532 = vrot.lane.b32.xlu0 %v2453_v44, %s2282_s21  ;;  %570 = vrot.lane.b32.xlu1 %v2451_v42, %s2283_s26 }
 0x21c   : > { %v613_v45 = vld [vmem:[#allocation2] sm:$0xff] }
 0x21d   : > { %2011 = vmatprep.mubr.msk.f32.mxu1 %vm511_vm1, %v613_v45 }
 0x21f   : > { %568 = vrot.lane.b32.xlu0 %v2453_v44, %s2283_s26  ;;  %541 = vrot.lane.b32.xlu1 %v2453_v44, %s2280_s18 }
 0x223   : > { %559 = vrot.lane.b32.xlu0 %v2453_v44, %s2284_s27  ;;  %597 = vrot.lane.b32.xlu1 %v2451_v42, %s2285_s28 }
 0x227   : > { %586 = vrot.lane.b32.xlu0 %v2453_v44, %s2286_s29  ;;  %561 = vrot.lane.b32.xlu1 %v2451_v42, %s2284_s27  ;;  %s363_s27 = sand.u32 1, %s2270_s14  }
 0x22b   : > { %595 = vrot.lane.b32.xlu1 %v2453_v44, %s2285_s28  ;;  %s1883_s28 = sshll.u32 %s363_s27, 4 }
 0x22f   : > { %588 = vrot.lane.b32.xlu1 %v2451_v42, %s2286_s29  ;;  %s2743_s29 = smov 8  }
 0x285   : > { %v544_v46 = vpop.permute.xlu1 %543  ;;  %v519_v47 = vpop.permute.xlu0 %518 }
 0x286   : > { %549 = vst.msk [vmem:[#allocation3 + $0x18] sm:$0xff] %vm511_vm1, %v544_v46  ;;  %523 = vst.msk [vmem:[#allocation3 + $0x8] sm:$0xff] %vm511_vm1, %v519_v47 }
 0x289   : > { %v535_v48 = vpop.permute.xlu0 %534  ;;  %v517_v49 = vpop.permute.xlu1 %516 }
 0x28a   : > { %540 = vst.msk [vmem:[#allocation2 + $0x18] sm:$0xff] %vm511_vm1, %v535_v48  ;;  %522 = vst.msk [vmem:[#allocation3] sm:$0xff] %vm511_vm1, %v517_v49 }
 0x28d   : > { %v533_v50 = vpop.permute.xlu0 %532  ;;  %v571_v51 = vpop.permute.xlu1 %570  ;;  %v622_v52 = vld [vmem:[#allocation3 + $0x8] sm:$0xff]  ;;  %v624_v56 = vld [vmem:[#allocation3 + $0x18] sm:$0xff] }
 0x28e   : > { %539 = vst.msk [vmem:[#allocation2 + $0x10] sm:$0xff] %vm511_vm1, %v533_v50  ;;  %576 = vst.msk [vmem:[#allocation3 + $0x28] sm:$0xff] %vm511_vm1, %v571_v51  ;;  %2007 = vmatprep.subr.msk.mxu1 %vm511_vm1, %v622_v52 }
 0x28f   : > { %2008 = vmatpush3.xpose.msk.msra.mxu1 %vm511_vm1, %v622_v52 }
 0x291   : > { %v569_v53 = vpop.permute.xlu0 %568  ;;  %v542_v54 = vpop.permute.xlu1 %541  ;;  %v621_v55 = vld [vmem:[#allocation3] sm:$0xff]  ;;  %v616_v4 = vld [vmem:[#allocation2 + $0x18] sm:$0xff] }
 0x292   : > { %575 = vst.msk [vmem:[#allocation3 + $0x20] sm:$0xff] %vm511_vm1, %v569_v53  ;;  %548 = vst.msk [vmem:[#allocation3 + $0x10] sm:$0xff] %vm511_vm1, %v542_v54  ;;  %2009 = vmatprep.subr.msk.mxu1 %vm511_vm1, %v621_v55 }
 0x293   : > { %2010 = vmatpush3.xpose.msk.msra.mxu1 %vm511_vm1, %v621_v55 }
 0x294   : > { %2014 = vmatprep.subr.msk.mxu1 %vm511_vm1, %v624_v56 }
 0x295   : > { %v560_v57 = vpop.permute.xlu0 %559  ;;  %v598_v58 = vpop.permute.xlu1 %597  ;;  %v615_v60 = vld [vmem:[#allocation2 + $0x10] sm:$0xff]  ;;  %v626_v2 = vld [vmem:[#allocation3 + $0x28] sm:$0xff] }
 0x296   : > { %566 = vst.msk [vmem:[#allocation2 + $0x20] sm:$0xff] %vm511_vm1, %v560_v57  ;;  %603 = vst.msk [vmem:[#allocation3 + $0x38] sm:$0xff] %vm511_vm1, %v598_v58  ;;  %2012 = vmatmul.mubr.msk.f32.vlgmr.msra.gmra.mxu1 %vm511_vm1, %v614_v59 }
 0x297   : > { %2015 = vmatpush3.xpose.msk.msra.mxu1 %vm511_vm1, %v624_v56  ;;  %2018 = vmatprep.mubr.msk.f32.mxu1 %vm511_vm1, %v615_v60 }
 0x299   : > { %v587_v61 = vpop.permute.xlu0 %586  ;;  %v562_v62 = vpop.permute.xlu1 %561  ;;  %v623_v63 = vld [vmem:[#allocation3 + $0x10] sm:$0xff]  ;;  %v625_v7 = vld [vmem:[#allocation3 + $0x20] sm:$0xff] }
 0x29a   : > { %593 = vst.msk [vmem:[#allocation2 + $0x30] sm:$0xff] %vm511_vm1, %v587_v61  ;;  %567 = vst.msk [vmem:[#allocation2 + $0x28] sm:$0xff] %vm511_vm1, %v562_v62  ;;  %2016 = vmatprep.subr.msk.mxu1 %vm511_vm1, %v623_v63 }
 0x29b   : > { %2017 = vmatpush3.xpose.msk.msra.mxu1 %vm511_vm1, %v623_v63 }
 0x29c   : > { %2021 = vmatprep.subr.msk.mxu1 %vm511_vm1, %v626_v2 }
 0x29d   : > { %v596_v3 = vpop.permute.xlu1 %595  ;;  %v628_v5 = vld [vmem:[#allocation3 + $0x38] sm:$0xff]  ;;  %v617_v6 = vld [vmem:[#allocation2 + $0x20] sm:$0xff] }
 0x29e   : > { %602 = vst.msk [vmem:[#allocation3 + $0x30] sm:$0xff] %vm511_vm1, %v596_v3  ;;  %2019 = vmatmul.mubr.msk.f32.vlgmr.msra.gmra.mxu1 %vm511_vm1, %v616_v4  ;;  %2028 = vmatprep.subr.msk.mxu0 %vm511_vm1, %v628_v5 }
 0x29f   : > { %2022 = vmatpush3.xpose.msk.msra.mxu1 %vm511_vm1, %v626_v2  ;;  %2025 = vmatprep.mubr.msk.f32.mxu1 %vm511_vm1, %v617_v6 }
 0x2a0   : > { %2029 = vmatpush3.xpose.msk.msra.mxu0 %vm511_vm1, %v628_v5  ;;  %2023 = vmatprep.subr.msk.mxu1 %vm511_vm1, %v625_v7 }
 0x2a1   : > { %v589_v8 = vpop.permute.xlu1 %588  ;;  %v619_v9 = vld [vmem:[#allocation2 + $0x30] sm:$0xff]  ;;  %v618_v10 = vld [vmem:[#allocation2 + $0x28] sm:$0xff] }
 0x2a2   : > { %594 = vst.msk [vmem:[#allocation2 + $0x38] sm:$0xff] %vm511_vm1, %v589_v8  ;;  %2032 = vmatprep.mubr.msk.f32.mxu0 %vm511_vm1, %v619_v9 }
 0x2a3   : > { %2024 = vmatpush3.xpose.msk.msra.mxu1 %vm511_vm1, %v625_v7 }
 0x2a5   : > { %v627_v11 = vld [vmem:[#allocation3 + $0x30] sm:$0xff] }
 0x2a6   : > { %2026 = vmatmul.mubr.msk.f32.vlgmr.msra.gmra.mxu1 %vm511_vm1, %v618_v10  ;;  %2030 = vmatprep.subr.msk.mxu0 %vm511_vm1, %v627_v11 }
 0x2a7   : > { %2031 = vmatpush3.xpose.msk.msra.mxu0 %vm511_vm1, %v627_v11 }
 0x2a9   : > { %v620_v12 = vld [vmem:[#allocation2 + $0x38] sm:$0xff] }
 0x2aa   : > { %2033 = vmatmul.mubr.msk.f32.vlgmr.msra.gmra.mxu0 %vm511_vm1, %v620_v12 }
 0x356   : > { %v2013_v13 = vpop.f32.mrf.mxu1 }
 0x357   : > { %v989_v14 = vsel %vm985_vm2, %v2013_v13, -inf }
 0x358   : > { %990 = vmax.xlane.f32.xlu1 %v989_v14  ;;  %v715_v15 = vpop.f32.mrf.mxu1 }
 0x359   : > { %v986_v16 = vsel %vm985_vm2, %v715_v15, -inf }
 0x35a   : > { %987 = vmax.xlane.f32.xlu0 %v986_v16 }
 0x35e   : > { %v2020_v17 = vpop.f32.mrf.mxu1 }
 0x35f   : > { %v995_v18 = vsel %vm985_vm2, %v2020_v17, -inf }
 0x360   : > { %996 = vmax.xlane.f32.xlu0 %v995_v18  ;;  %v802_v19 = vpop.f32.mrf.mxu1 }
 0x361   : > { %v992_v20 = vsel %vm985_vm2, %v802_v19, -inf }
 0x364   : > { %993 = vmax.xlane.f32.xlu0 %v992_v20 }
 0x366   : > { %v2027_v21 = vpop.f32.mrf.mxu1 }
 0x367   : > { %v1001_v22 = vsel %vm985_vm2, %v2027_v21, -inf }
 0x368   : > { %1002 = vmax.xlane.f32.xlu1 %v1001_v22  ;;  %v889_v23 = vpop.f32.mrf.mxu1 }
 0x369   : > { %v998_v24 = vsel %vm985_vm2, %v889_v23, -inf }
 0x36a   : > { %v2034_v28 = vpop.f32.mrf.mxu0  ;;  %999 = vmax.xlane.f32.xlu0 %v998_v24 }
 0x36b   : > { %v1007_v29 = vsel %vm985_vm2, %v2034_v28, -inf }
 0x36c   : > { %v976_v30 = vpop.f32.mrf.mxu0  ;;  %1008 = vmax.xlane.f32.xlu1 %v1007_v29 }
 0x36d   : > { %v1004_v31 = vsel %vm985_vm2, %v976_v30, -inf }
 0x36e   : > { %1005 = vmax.xlane.f32.xlu0 %v1004_v31 }
 0x37d   : > { %524 = vrot.lane.b32.xlu1 %v2453_v44, %s2287_s30 }
 0x381   : > { %552 = vrot.lane.b32.xlu1 %v2451_v42, %s2288_s11 }
 0x384   : > { %526 = vrot.lane.b32.xlu0 %v2451_v42, %s2287_s30  ;;  %s2294_s30 = smov [#allocation6]  }
 0x385   : > { %550 = vrot.lane.b32.xlu1 %v2453_v44, %s2288_s11  ;;  %s2222_s11 = sshll.u32 %s2294_s30, 4  ;;  %s2223_s11 = int_to_ptr.vmem [resolvable:$false] %s2222_s11 }
 0x388   : > { %579 = vrot.lane.b32.xlu0 %v2451_v42, %s2289_s25 }
 0x389   : > { %606 = vrot.lane.b32.xlu1 %v2451_v42, %s2290_s12 }
 0x3e1   : > { %v991_v32 = vpop.xlane.xlu1 %990 }
 0x3e2   : > { %v1011_v33 = vsub.f32 %v2013_v13, %v991_v32 }
 0x3e3   : > { %v988_v34 = vpop.xlane.xlu0 %987 }
 0x3e4   : > { %v1020_v35 = vmul.f32 1.442695, %v1011_v33  ;;  %v1010_v36 = vsub.f32 %v715_v15, %v988_v34 }
 0x3e6   : > { %2178 = vpow2.f32 %v1020_v35  ;;  %v1018_v37 = vmul.f32 1.442695, %v1010_v36 }
 0x3e8   : > { %2180 = vpow2.f32 %v1018_v37 }
 0x3e9   : > { %v997_v38 = vpop.xlane.xlu0 %996 }
 0x3ea   : > { %v1013_v43 = vsub.f32 %v2020_v17, %v997_v38 }
 0x3ec   : > { %v1024_v51 = vmul.f32 1.442695, %v1013_v43 }
 0x3ed   : > { %v994_v39 = vpop.xlane.xlu0 %993 }
 0x3ee   : > { %v1012_v48 = vsub.f32 %v802_v19, %v994_v39 }
 0x3f0   : > { %v1022_v57 = vmul.f32 1.442695, %v1012_v48 }
 0x3f1   : > { %v1003_v40 = vpop.xlane.xlu1 %1002 }
 0x3f2   : > { %v1015_v53 = vsub.f32 %v2027_v21, %v1003_v40 }
 0x3f3   : > { %v2527_v41 = vpop.eup %2178  ;;  %v1000_v45 = vpop.xlane.xlu0 %999 }
 0x3f4   : > { %v1037_v46 = vsel %vm985_vm2, %v2527_v41, 0.0  ;;  %v1014_v58 = vsub.f32 %v889_v23, %v1000_v45  ;;  %v1028_v61 = vmul.f32 1.442695, %v1015_v53 }
 0x3f5   : > { %v2531_v47 = vpop.eup %2180  ;;  %1038 = vadd.xlane.f32.xlu1 %v1037_v46  ;;  %v1009_v42 = vpop.xlane.xlu1 %1008 }
 0x3f6   : > { %v1017_v49 = vsub.f32 %v2034_v28, %v1009_v42  ;;  %v1034_v50 = vsel %vm985_vm2, %v2531_v47, 0.0  ;;  %v1026_v63 = vmul.f32 1.442695, %v1014_v58 }
 0x3f7   : > { %1035 = vadd.xlane.f32.xlu0 %v1034_v50  ;;  %v1006_v52 = vpop.xlane.xlu0 %1005 }
 0x3f8   : > { %v1032_v54 = vmul.f32 1.442695, %v1017_v49  ;;  %v1016_v55 = vsub.f32 %v976_v30, %v1006_v52 }
 0x3f9   : > { %v525_v56 = vpop.permute.xlu1 %524 }
 0x3fa   : > { %2182 = vpow2.f32 %v1032_v54  ;;  %v1030_v59 = vmul.f32 1.442695, %v1016_v55  ;;  %530 = vst.msk [vmem:[#allocation4] sm:$0xff] %vm511_vm1, %v525_v56  ;;  %v1438_v56 = vld [vmem:[%s2736_s4 + $0x18] sm:$0xff] }
 0x3fb   : > { %2184 = vpow2.f32 %v1024_v51  ;;  %v527_v60 = vpop.permute.xlu0 %526 }
 0x3fc   : > { %2186 = vpow2.f32 %v1030_v59  ;;  %531 = vst.msk [vmem:[#allocation4 + $0x8] sm:$0xff] %vm511_vm1, %v527_v60  ;;  %v1436_v59 = vld [vmem:[%s2736_s4 + $0x8] sm:$0xff] }
 0x3fd   : > { %v553_v62 = vpop.permute.xlu1 %552  ;;  %2188 = vpow2.f32 %v1022_v57  ;;  %v1437_v57 = vld [vmem:[%s2736_s4 + $0x10] sm:$0xff] }
 0x3fe   : > { %558 = vst.msk [vmem:[#allocation4 + $0x18] sm:$0xff] %vm511_vm1, %v553_v62  ;;  %2190 = vpow2.f32 %v1028_v61  ;;  %v1435_v61 = vld [vmem:[%s2736_s4] sm:$0xff] }
 0x3ff   : > { %v580_v2 = vpop.permute.xlu0 %579  ;;  %2192 = vpow2.f32 %v1026_v63 }
 0x400   : > { %585 = vst.msk [vmem:[#allocation4 + $0x28] sm:$0xff] %vm511_vm1, %v580_v2 }
 0x401   : > { %v551_v3 = vpop.permute.xlu1 %550  ;;  %v629_v6 = vld [vmem:[#allocation4] sm:$0xff] }
 0x402   : > { %557 = vst.msk [vmem:[#allocation4 + $0x10] sm:$0xff] %vm511_vm1, %v551_v3 }
 0x403   : > { %v630_v4 = vld [vmem:[#allocation4 + $0x8] sm:$0xff] }
 0x404   : > { %2035 = vmatprep.subr.mxu1 %v630_v4 }
 0x405   : > { %v607_v5 = vpop.permute.xlu1 %606  ;;  %2036 = vmatpush3.msra.mxu1 %v630_v4  ;;  %v632_v8 = vld [vmem:[#allocation4 + $0x18] sm:$0xff] }
 0x406   : > { %612 = vst.msk [vmem:[#allocation4 + $0x38] sm:$0xff] %vm511_vm1, %v607_v5  ;;  %2037 = vmatprep.subr.mxu1 %v629_v6 }
 0x407   : > { %v2541_v7 = vpop.eup %2182  ;;  %2038 = vmatpush3.msra.mxu1 %v629_v6  ;;  %v634_v9 = vld [vmem:[#allocation4 + $0x28] sm:$0xff] }
 0x408   : > { %v2185_v10 = vpop.eup %2184  ;;  %2042 = vmatprep.subr.mxu1 %v632_v8  ;;  %2049 = vmatprep.subr.mxu0 %v634_v9  ;;  %v1055_v11 = vsel %vm985_vm2, %v2541_v7, 0.0 }
 0x409   : > { %v2187_v12 = vpop.eup %2186  ;;  %1056 = vadd.xlane.f32.xlu1 %v1055_v11  ;;  %2050 = vmatpush3.msra.mxu0 %v634_v9  ;;  %v1043_v15 = vsel %vm985_vm2, %v2185_v10, 0.0  ;;  %v631_v31 = vld [vmem:[#allocation4 + $0x10] sm:$0xff] }
 0x40a   : > { %v1052_v13 = vsel %vm985_vm2, %v2187_v12, 0.0  ;;  %v2189_v14 = vpop.eup %2188 }
 0x40b   : > { %1053 = vadd.xlane.f32.xlu0 %v1052_v13  ;;  %v2191_v16 = vpop.eup %2190  ;;  %v1040_v17 = vsel %vm985_vm2, %v2189_v14, 0.0  ;;  %v1914_v13 = vld [vmem:[%s2737_s5] ss:$0 sm:$0xff] }
 0x40c   : > { %v2193_v18 = vpop.eup %2192  ;;  %v1049_v19 = vsel %vm985_vm2, %v2191_v16, 0.0 }
 0x40d   : > { %1044 = vadd.xlane.f32.xlu1 %v1043_v15  ;;  %v1046_v20 = vsel %vm985_vm2, %v2193_v18, 0.0 }
 0x40f   : > { %1041 = vadd.xlane.f32.xlu0 %v1040_v17 }
 0x411   : > { %1050 = vadd.xlane.f32.xlu1 %v1049_v19 }
 0x413   : > { %1047 = vadd.xlane.f32.xlu0 %v1046_v20 }
 0x422   : > { %604 = vrot.lane.b32.xlu1 %v2453_v44, %s2290_s12  ;;  %s2293_s12 = smov 24  }
 0x429   : > { %577 = vrot.lane.b32.xlu0 %v2453_v44, %s2289_s25  ;;  %v636_v44 = vld [vmem:[#allocation4 + $0x38] sm:$0xff]  ;;  %s2292_s25 = smov 16  }
 0x47e   : > { %v1039_v21 = vpop.xlane.xlu1 %1038 }
 0x47f   : > { %2194 = vrcp.f32 %v1039_v21 }
 0x480   : > { %v1036_v22 = vpop.xlane.xlu0 %1035 }
 0x481   : > { %2196 = vrcp.f32 %v1036_v22 }
 0x48c   : > { %v2195_v23 = vpop.eup %2194 }
 0x48d   : > { %v1067_v29 = vmul.f32 %v2195_v23, %v2527_v41 }
 0x48e   : > { %v2197_v24 = vpop.eup %2196 }
 0x48f   : > { %v1066_v28 = vmul.f32 %v2197_v24, %v2531_v47 }
 0x491   : > { %2039 = vmatprep.mubr.msk.f32.mxu1 %vm985_vm2, %v1066_v28 }
 0x492   : > { %v1057_v30 = vpop.xlane.xlu1 %1056  ;;  %2040 = vmatmul.mubr.msk.f32.vlgmr.msra.gmra.mxu1 %vm985_vm2, %v1067_v29 }
 0x493   : > { %2043 = vmatpush3.msra.mxu1 %v632_v8 }
 0x494   : > { %2044 = vmatprep.subr.mxu1 %v631_v31  ;;  %v1054_v32 = vpop.xlane.xlu0 %1053 }
 0x495   : > { %2045 = vmatpush3.msra.mxu1 %v631_v31  ;;  %2198 = vrcp.f32 %v1054_v32 }
 0x496   : > { %2056 = vmatprep.subr.mxu1 %v636_v44  ;;  %v1045_v33 = vpop.xlane.xlu1 %1044 }
 0x497   : > { %2200 = vrcp.f32 %v1045_v33 }
 0x498   : > { %v1042_v34 = vpop.xlane.xlu0 %1041 }
 0x499   : > { %2202 = vrcp.f32 %v1042_v34 }
 0x49a   : > { %v1051_v35 = vpop.xlane.xlu1 %1050  ;;  %2204 = vrcp.f32 %v1057_v30 }
 0x49b   : > { %2206 = vrcp.f32 %v1051_v35  ;;  %v1576_v35 = vld [vmem:[%s2738_s6 + $0x18] sm:$0xff] }
 0x49c   : > { %v1048_v36 = vpop.xlane.xlu0 %1047 }
 0x49d   : > { %2208 = vrcp.f32 %v1048_v36  ;;  %v1575_v36 = vld [vmem:[%s2738_s6 + $0x10] sm:$0xff] }
 0x49e   : > { %v605_v37 = vpop.permute.xlu1 %604 }
 0x49f   : > { %611 = vst.msk [vmem:[#allocation4 + $0x30] sm:$0xff] %vm511_vm1, %v605_v37  ;;  %v1574_v37 = vld [vmem:[%s2738_s6 + $0x8] sm:$0xff] }
 0x4a0   : > { %v578_v38 = vpop.permute.xlu0 %577 }
 0x4a1   : > { %584 = vst.msk [vmem:[#allocation4 + $0x20] sm:$0xff] %vm511_vm1, %v578_v38  ;;  %v1573_v38 = vld [vmem:[%s2738_s6] sm:$0xff] }
 0x4a2   : > { %v2199_v39 = vpop.eup %2198 }
 0x4a3   : > { %v1072_v48 = vmul.f32 %v2199_v39, %v2187_v12  ;;  %v1529_v12 = vsub.s32 2, %v2435_v25 }
 0x4a4   : > { %v2201_v40 = vpop.eup %2200 }
 0x4a5   : > { %v1069_v47 = vmul.f32 %v2201_v40, %v2185_v10 }
 0x4a6   : > { %v2203_v41 = vpop.eup %2202  ;;  %v635_v50 = vld [vmem:[#allocation4 + $0x30] sm:$0xff] }
 0x4a7   : > { %v1068_v43 = vmul.f32 %v2203_v41, %v2189_v14  ;;  %v2205_v45 = vpop.eup %2204  ;;  %v1530_v14 = vrot.slane %v2437_v26, %v1529_v12 }
 0x4a8   : > { %v633_v46 = vld [vmem:[#allocation4 + $0x20] sm:$0xff]  ;;  %v2207_v42 = vpop.eup %2206  ;;  %v1073_v53 = vmul.f32 %v2205_v45, %v2541_v7 }
 0x4a9   : > { %2046 = vmatprep.mubr.msk.f32.mxu1 %vm985_vm2, %v1068_v43  ;;  %2051 = vmatprep.subr.mxu0 %v633_v46  ;;  %v1071_v52 = vmul.f32 %v2207_v42, %v2191_v16  ;;  %v1569_v42 = vsub.s32 3, %v2435_v25 }
 0x4aa   : > { %v2209_v49 = vpop.eup %2208  ;;  %2047 = vmatmul.mubr.msk.f32.vlgmr.msra.gmra.mxu1 %vm985_vm2, %v1069_v47  ;;  %2052 = vmatpush3.msra.mxu0 %v633_v46  ;;  %v1563_v47 = vsub.s32 4, %v2435_v25 }
 0x4ab   : > { %2057 = vmatpush3.msra.mxu1 %v636_v44  ;;  %2060 = vmatprep.mubr.msk.f32.mxu1 %vm985_vm2, %v1072_v48  ;;  %v1070_v51 = vmul.f32 %v2209_v49, %v2193_v18 }
 0x4ac   : > { %2058 = vmatprep.subr.mxu1 %v635_v50  ;;  %2063 = vmatprep.subr.mxu0 %v1438_v56  ;;  %v1564_v48 = vrot.slane %v2440_v27, %v1563_v47  ;;  %v1697_v27 = vld [vmem:[%s2740_s8 + $0x70] sm:$0xff] }
 0x4ad   : > { %2059 = vmatpush3.msra.mxu1 %v635_v50  ;;  %2053 = vmatprep.mubr.msk.f32.mxu0 %vm985_vm2, %v1070_v51  ;;  %v1570_v51 = vrot.slane %v2437_v26, %v1569_v42 }
 0x4ae   : > { %2054 = vmatmul.mubr.msk.f32.vlgmr.msra.gmra.mxu0 %vm985_vm2, %v1071_v52  ;;  %2061 = vmatmul.mubr.msk.f32.vlgmr.msra.gmra.mxu1 %vm985_vm2, %v1073_v53 }
 0x4af   : > { %2064 = vmatpush3.msra.mxu0 %v1438_v56  ;;  %2074 = vmatprep.subr.mxu1 %v1576_v35 }
 0x4b0   : > { %2065 = vmatprep.subr.mxu0 %v1437_v57  ;;  %2075 = vmatpush3.msra.mxu1 %v1576_v35 }
 0x4b1   : > { %2066 = vmatpush3.msra.mxu0 %v1437_v57  ;;  %2076 = vmatprep.subr.mxu1 %v1575_v36 }
 0x4b2   : > { %2067 = vmatprep.subr.mxu0 %v1436_v59  ;;  %2077 = vmatpush3.msra.mxu1 %v1575_v36  ;;  %v1783_v36 = vsub.s32 5, %v2435_v25 }
 0x4b3   : > { %2068 = vmatpush3.msra.mxu0 %v1436_v59  ;;  %2078 = vmatprep.subr.mxu1 %v1574_v37  ;;  %v1696_v59 = vld [vmem:[%s2740_s8 + $0x68] sm:$0xff] }
 0x4b4   : > { %2069 = vmatprep.subr.mxu0 %v1435_v61  ;;  %2079 = vmatpush3.msra.mxu1 %v1574_v37  ;;  %v1920_v37 = vld [vmem:[%s2741_s9] ss:$0 sm:$0xff] }
 0x4b5   : > { %2070 = vmatpush3.msra.mxu0 %v1435_v61  ;;  %2080 = vmatprep.subr.mxu1 %v1573_v38  ;;  %v1694_v61 = vld [vmem:[%s2740_s8 + $0x58] sm:$0xff] }
 0x4b6   : > { %2081 = vmatpush3.msra.mxu1 %v1573_v38  ;;  %v1784_v38 = vrot.slane %v2437_v26, %v1783_v36 }
 0x552   : > { %v2041_v54 = vpop.f32.mrf.mxu1 }
 0x553   : > { %1399 = vst.msk [vmem:[#allocation5 + $0x8] sm:$0xff] %vm511_vm1, %v2041_v54 }
 0x554   : > { %v1146_v55 = vpop.f32.mrf.mxu1 }
 0x555   : > { %1398 = vst.msk [vmem:[#allocation5] sm:$0xff] %vm511_vm1, %v1146_v55 }
 0x56a   : > { %v2048_v58 = vpop.f32.mrf.mxu1 }
 0x56b   : > { %1404 = vrot.lane.b32.xlu1 %v2048_v58, %s2743_s29  ;;  %v1698_v58 = vld [vmem:[%s2740_s8 + $0x78] sm:$0xff] }
 0x56c   : > { %v1227_v60 = vpop.f32.mrf.mxu1  ;;  %2085 = vmatprep.subr.mxu0 %v1698_v58 }
 0x56d   : > { %1402 = vrot.lane.b32.xlu0 %v1227_v60, %s2743_s29  ;;  %v1695_v60 = vld [vmem:[%s2740_s8 + $0x60] sm:$0xff] }
 0x56e   : > { %v2055_v62 = vpop.f32.mrf.mxu0  ;;  %v2062_v63 = vpop.f32.mrf.mxu1 }
 0x56f   : > { %1415 = vrot.lane.b32.xlu1 %v2055_v62, %s2292_s25  ;;  %v1693_v62 = vld [vmem:[%s2740_s8 + $0x50] sm:$0xff] }
 0x570   : > { %v1308_v2 = vpop.f32.mrf.mxu0  ;;  %v1389_v3 = vpop.f32.mrf.mxu1 }
 0x571   : > { %1413 = vrot.lane.b32.xlu0 %v1308_v2, %s2292_s25  ;;  %v1691_v2 = vld [vmem:[%s2740_s8 + $0x40] sm:$0xff]  ;;  %s1927_s25 = sshll.u32 %s2372_s17, 8  ;;  %s2691_s17 = scalar_lea.sflag [#allocation7], %s363_s27 }
 0x572   : > { %s2684_s26 = scalar_lea.hbm %s2742_s10, %s1927_s25  ;;  %s2224_s25 = scalar_lea.vmem %s2223_s11, 512 }
 0x573   : > { %1426 = vrot.lane.b32.xlu1 %v2062_v63, %s2293_s12  ;;  %v1692_v63 = vld [vmem:[%s2740_s8 + $0x48] sm:$0xff] }
 0x575   : > { %1424 = vrot.lane.b32.xlu0 %v1389_v3, %s2293_s12  ;;  %v1690_v3 = vld [vmem:[%s2740_s8 + $0x38] sm:$0xff]  ;;  %s365_s12 = scalar_lea.vmem [#allocation6], %s1883_s28 }
 0x576   : > { %s1805_s18 = sshll.u32 %s365_s12, 4  ;;  %s2688_s18 = int_to_ptr.vmem [resolvable:$true] %s1805_s18 }
 0x577   : > { %s2218_s28 = scalar_lea.vmem %s2688_s18, 256  ;;  %p2225_p0 = scmp.lt.s32.totalorder %s2688_s18, %s2223_s11 }
 0x578   : > { %p2219_p11 = scmp.ne.s32.totalorder %s2688_s18, %s2218_s28  ;;  %p2226_p1 = scmp.lt.s32.totalorder %s2224_s25, %s2218_s28 }
 0x57a   : > { %p2220_p12 = pnand %p2219_p11, %p2389_p5  ;;  %p2227_p2 = por %p2226_p1, %p2225_p0 }
 0x57c   : > { %p2221_p13 = pneg %p2220_p12 }
 0x57e   : > { %p2228_p3 = pnand %p2227_p2, %p2221_p13 }
 0x5dd   : > { %v1405_v4 = vpop.permute.xlu1 %1404 }
 0x5de   : > { %1410 = vst.msk [vmem:[#allocation5 + $0x8] sm:$0xff] %vm1408_vm3, %v1405_v4  ;;  %v1689_v4 = vld [vmem:[%s2740_s8 + $0x30] sm:$0xff] }
 0x5df   : > { %v1403_v5 = vpop.permute.xlu0 %1402 }
 0x5e0   : > { %1409 = vst.msk [vmem:[#allocation5] sm:$0xff] %vm1408_vm3, %v1403_v5  ;;  %v1688_v5 = vld [vmem:[%s2740_s8 + $0x28] sm:$0xff] }
 0x5e1   : > { %v1416_v6 = vpop.permute.xlu1 %1415 }
 0x5e2   : > { %1421 = vst.msk [vmem:[#allocation5 + $0x8] sm:$0xff] %vm1419_vm4, %v1416_v6  ;;  %v1687_v6 = vld [vmem:[%s2740_s8 + $0x20] sm:$0xff] }
 0x5e3   : > { %v1414_v7 = vpop.permute.xlu0 %1413 }
 0x5e4   : > { %1420 = vst.msk [vmem:[#allocation5] sm:$0xff] %vm1419_vm4, %v1414_v7  ;;  %v1686_v7 = vld [vmem:[%s2740_s8 + $0x18] sm:$0xff] }
 0x5e5   : > { %v1427_v8 = vpop.permute.xlu1 %1426 }
 0x5e6   : > { %1432 = vst.msk [vmem:[#allocation5 + $0x8] sm:$0xff] %vm1430_vm5, %v1427_v8  ;;  %v1685_v8 = vld [vmem:[%s2740_s8 + $0x10] sm:$0xff] }
 0x5e7   : > { %v1425_v9 = vpop.permute.xlu0 %1424 }
 0x5e8   : > { %1431 = vst.msk [vmem:[#allocation5] sm:$0xff] %vm1430_vm5, %v1425_v9  ;;  %v1684_v9 = vld [vmem:[%s2740_s8 + $0x8] sm:$0xff] }
 0x5ed   : > { %v1434_v11 = vld [vmem:[#allocation5 + $0x8] sm:$0xff] }
 0x5ef   : > { %v1433_v10 = vld [vmem:[#allocation5] sm:$0xff] }
 0x5f0   : > { %2071 = vmatprep.mubr.msk.f32.mxu0 %vm378_vm0, %v1433_v10  ;;  %v1683_v10 = vld [vmem:[%s2740_s8] sm:$0xff] }
 0x5f1   : > { %2072 = vmatmul.mubr.msk.f32.vlgmr.msra.gmra.mxu0 %vm378_vm0, %v1434_v11  ;;  %v1917_v11 = vld [vmem:[%s2739_s7] ss:$0 sm:$0xff] }
 0x5f2   : > { %2086 = vmatpush3.msra.mxu0 %v1698_v58 }
 0x5f3   : > { %2087 = vmatprep.subr.mxu0 %v1697_v27 }
 0x5f4   : > { %2088 = vmatpush3.msra.mxu0 %v1697_v27 }
 0x5f5   : > { %2089 = vmatprep.subr.mxu0 %v1696_v59 }
 0x5f6   : > { %2090 = vmatpush3.msra.mxu0 %v1696_v59 }
 0x5f7   : > { %2091 = vmatprep.subr.mxu0 %v1695_v60 }
 0x5f8   : > { %2092 = vmatpush3.msra.mxu0 %v1695_v60 }
 0x5f9   : > { %2093 = vmatprep.subr.mxu0 %v1694_v61 }
 0x5fa   : > { %2094 = vmatpush3.msra.mxu0 %v1694_v61 }
 0x5fb   : > { %2095 = vmatprep.subr.mxu0 %v1693_v62 }
 0x5fc   : > { %2096 = vmatpush3.msra.mxu0 %v1693_v62 }
 0x5fd   : > { %2097 = vmatprep.subr.mxu0 %v1692_v63 }
 0x5fe   : > { %2098 = vmatpush3.msra.mxu0 %v1692_v63 }
 0x5ff   : > { %2099 = vmatprep.subr.mxu0 %v1691_v2 }
 0x600   : > { %2100 = vmatpush3.msra.mxu0 %v1691_v2 }
 0x601   : > { %2101 = vmatprep.subr.mxu0 %v1690_v3 }
 0x602   : > { %2102 = vmatpush3.msra.mxu0 %v1690_v3 }
 0x603   : > { %2103 = vmatprep.subr.mxu0 %v1689_v4 }
 0x604   : > { %2104 = vmatpush3.msra.mxu0 %v1689_v4 }
 0x605   : > { %2105 = vmatprep.subr.mxu0 %v1688_v5 }
 0x606   : > { %2106 = vmatpush3.msra.mxu0 %v1688_v5 }
 0x607   : > { %2107 = vmatprep.subr.mxu0 %v1687_v6 }
 0x608   : > { %2108 = vmatpush3.msra.mxu0 %v1687_v6 }
 0x609   : > { %2109 = vmatprep.subr.mxu0 %v1686_v7 }
 0x60a   : > { %2110 = vmatpush3.msra.mxu0 %v1686_v7 }
 0x60b   : > { %2111 = vmatprep.subr.mxu0 %v1685_v8 }
 0x60c   : > { %2112 = vmatpush3.msra.mxu0 %v1685_v8 }
 0x60d   : > { %2113 = vmatprep.subr.mxu0 %v1684_v9 }
 0x60e   : > { %2114 = vmatpush3.msra.mxu0 %v1684_v9 }
 0x60f   : > { %2115 = vmatprep.subr.mxu0 %v1683_v10 }
 0x610   : > { %2116 = vmatpush3.msra.mxu0 %v1683_v10 }
 0x6b1   : > { %v2073_v15 = vpop.f32.mrf.mxu0 }
 0x6b2   : > { %v1524_v16 = vadd.f32 %v2073_v15, %v1914_v13 }
 0x6b3   : > { %v1518_v17 = vpop.f32.mrf.mxu0 }
 0x6b4   : > { %v1532_v18 = vmul.f32 %v1530_v14, %v1524_v16  ;;  %v1519_v19 = vadd.f32 %v1914_v13, %v1518_v17 }
 0x6b6   : > { %v2591_v20 = vadd.f32 %v1532_v18, %v2409_v1  ;;  %v1531_v21 = vmul.f32 %v1530_v14, %v1519_v19 }
 0x6b8   : > { %v2594_v22 = vadd.f32 %v1531_v21, %v2407_v0  ;;  %v1538_v23 = vsel %vm378_vm0, %v2591_v20, 0.0 }
 0x6b9   : > { %1539 = vadd.xlane.f32.xlu1 %v1538_v23 }
 0x6ba   : > { %v1535_v24 = vsel %vm378_vm0, %v2594_v22, 0.0 }
 0x6bb   : > { %1536 = vadd.xlane.f32.xlu0 %v1535_v24 }
 0x742   : > { %v1540_v28 = vpop.xlane.xlu1 %1539 }
 0x743   : > { %v1542_v29 = vmul.f32 0.03125, %v1540_v28 }
 0x744   : > { %v1537_v30 = vpop.xlane.xlu0 %1536 }
 0x745   : > { %v1541_v31 = vmul.f32 0.03125, %v1537_v30  ;;  %v1544_v32 = vsub.f32 %v2591_v20, %v1542_v29 }
 0x747   : > { %v1543_v1 = vsub.f32 %v2594_v22, %v1541_v31  ;;  %v1546_v33 = vmul.f32 %v1544_v32, %v1544_v32 }
 0x749   : > { %v1545_v44 = vmul.f32 %v1543_v1, %v1543_v1  ;;  %v1550_v34 = vsel %vm378_vm0, %v1546_v33, 0.0 }
 0x74b   : > { %v1547_v0 = vsel %vm378_vm0, %v1545_v44, 0.0 }
 0x74c   : > { %1548 = vadd.xlane.f32.xlu0 %v1547_v0 }
 0x750   : > { %1551 = vadd.xlane.f32.xlu0 %v1550_v34 }
 0x7d5   : > { %v1549_v39 = vpop.xlane.xlu0 %1548 }
 0x7d6   : > { %v1553_v40 = vmul.f32 0.03125, %v1549_v39 }
 0x7d8   : > { %v1555_v41 = vadd.f32 1e-06, %v1553_v40 }
 0x7d9   : > { %v1552_v43 = vpop.xlane.xlu0 %1551 }
 0x7da   : > { %2210 = vrsqrt.f32 %v1555_v41  ;;  %v1554_v45 = vmul.f32 0.03125, %v1552_v43 }
 0x7dc   : > { %v1556_v46 = vadd.f32 1e-06, %v1554_v45 }
 0x7de   : > { %2212 = vrsqrt.f32 %v1556_v46 }
 0x7e7   : > { %v2211_v49 = vpop.eup %2210 }
 0x7e8   : > { %v1559_v50 = vmul.f32 %v2211_v49, %v1543_v1 }
 0x7ea   : > { %v1565_v52 = vmul.f32 %v1564_v48, %v1559_v50 }
 0x7eb   : > { %v2213_v53 = vpop.eup %2212 }
 0x7ec   : > { %v1560_v54 = vmul.f32 %v2213_v53, %v1544_v32  ;;  %v1571_v55 = vadd.f32 %v1570_v51, %v1565_v52 }
 0x7ee   : > { %v1566_v56 = vmul.f32 %v1564_v48, %v1560_v54  ;;  %2082 = vmatprep.mubr.msk.f32.mxu1 %vm378_vm0, %v1571_v55 }
 0x7f0   : > { %v1572_v57 = vadd.f32 %v1570_v51, %v1566_v56 }
 0x7f2   : > { %2083 = vmatmul.mubr.msk.f32.vlgmr.msra.gmra.mxu1 %vm378_vm0, %v1572_v57 }
 0x8b2   : > { %v2084_v12 = vpop.f32.mrf.mxu1 }
 0x8b3   : > { %v1662_v13 = vadd.f32 %v2084_v12, %v1917_v11 }
 0x8b4   : > { %v1656_v14 = vpop.f32.mrf.mxu1 }
 0x8b5   : > { %v1668_v15 = vmul.f32 0.044715, %v1662_v13  ;;  %v1657_v16 = vadd.f32 %v1917_v11, %v1656_v14  ;;  %v1666_v33 = vmul.f32 0.5, %v1662_v13 }
 0x8b7   : > { %v1670_v17 = vmul.f32 %v1668_v15, %v1662_v13  ;;  %v1667_v18 = vmul.f32 0.044715, %v1657_v16  ;;  %v1665_v44 = vmul.f32 0.5, %v1657_v16 }
 0x8b9   : > { %v1672_v19 = vmul.f32 %v1670_v17, %v1662_v13  ;;  %v1669_v21 = vmul.f32 %v1667_v18, %v1657_v16 }
 0x8bb   : > { %v1674_v23 = vadd.f32 %v1672_v19, %v1662_v13  ;;  %v1671_v24 = vmul.f32 %v1669_v21, %v1657_v16 }
 0x8bd   : > { %v1673_v28 = vadd.f32 %v1671_v24, %v1657_v16  ;;  %v1676_v29 = vmul.f32 0.7978846, %v1674_v23 }
 0x8bf   : > { %v1675_v30 = vmul.f32 0.7978846, %v1673_v28  ;;  %2214 = vtanh.f32 %v1676_v29 }
 0x8c1   : > { %2216 = vtanh.f32 %v1675_v30 }
 0x8cc   : > { %v2215_v31 = vpop.eup %2214 }
 0x8cd   : > { %v1680_v1 = vadd.f32 1.0, %v2215_v31 }
 0x8ce   : > { %v2217_v32 = vpop.eup %2216 }
 0x8cf   : > { %v1679_v0 = vadd.f32 1.0, %v2217_v32  ;;  %v1682_v35 = vmul.f32 %v1680_v1, %v1666_v33 }
 0x8d1   : > { %v1681_v34 = vmul.f32 %v1679_v0, %v1665_v44 }
 0x8d3   : > { %2117 = vmatprep.mubr.f32.mxu0 %v1681_v34 }
 0x8d4   : > { %2118 = vmatmul.mubr.f32.vlgmr.msra.gmra.mxu0 %v1682_v35 }
 0x994   : > { %v2119_v39 = vpop.f32.mrf.mxu0 }
 0x995   : > { %v1778_v40 = vadd.f32 %v2119_v39, %v1920_v37 }
 0x996   : > { %v1772_v41 = vpop.f32.mrf.mxu0 }
 0x997   : > { %v1786_v43 = vmul.f32 %v1784_v38, %v1778_v40  ;;  %v1773_v45 = vadd.f32 %v1920_v37, %v1772_v41 }
 0x999   : > { %v1788_v46 = vadd.f32 %v1786_v43, %v2591_v20  ;;  %v1785_v47 = vmul.f32 %v1784_v38, %v1773_v45 }
 0x99b   : > { %1790 = vst.msk [vmem:[%s365_s12 + $0x8] sm:$0xff] %vm378_vm0, %v1788_v46  ;;  %v1787_v25 = vadd.f32 %v1785_v47, %v2594_v22 }
 0x99d   : > { %1789 = vst.msk [vmem:[%s365_s12] sm:$0xff] %vm378_vm0, %v1787_v25 }
 0x99e   : > { %2231 = shalt.err (!%p2228_p3)
}
 0x99f   : > { %s2232_s27 = scalar_lea.hbm %s2684_s26, 256  ;;  %s2236_s21 = scalar_lea.hbm %s2742_s10, 512 }
 0x9a0   : > { %p2233_p4 = scmp.ne.s32.totalorder %s2684_s26, %s2232_s27  ;;  %p2237_p9 = scmp.lt.s32.totalorder %s2684_s26, %s2742_s10 }
 0x9a1   : > { %p2238_p10 = scmp.lt.s32.totalorder %s2236_s21, %s2232_s27 }
 0x9a2   : > { %p2234_p7 = pnand %p2233_p4, %p2389_p5 }
 0x9a3   : > { %p2239_p11 = por %p2238_p10, %p2237_p9 }
 0x9a4   : > { %p2235_p8 = pneg %p2234_p7 }
 0x9a6   : > { %p2240_p12 = pnand %p2239_p11, %p2235_p8 }
 0x9a8   : > { %2243 = shalt.err (!%p2240_p12)
}
 0x9a9   : > { %s2295_s28 = smov 128   ;;  %s2746_s11 = smov 8  }
 0x9aa   : > { %2120 = dma.vmem_to_hbm [thread:$0]  (%p2389_p5), %s2688_s18, 256, %s2684_s26, %s2691_s17, %s2295_s28, %s2295_s28, %s2746_s11  }
 0x9ab PF: > { %p2126_p13 = scmp.ge.s32.totalorder %s2278_s16, 2  ;;  %s1820_s25 = sand.u32 1, %s2266_s13  }
 0x9ac   : > { %s1821_s29 = scalar_lea.sflag [#allocation7], %s1820_s25 }
 0x9ad   : > { %p2123_p0 = pnand %p2126_p13, %p2393_p6 }
 0x9af   : > { %p2124_p1 = pneg %p2123_p0 }
 0x9b1   : > { %2261 = dma.done.wait (%p2124_p1), %s1821_s29, 256  }
 0x9b2   : > { %2263 = vsyncadd (%p2124_p1), %s1821_s29, 4294967040  ;;  %p20_p2 = scmp.ge.s32.totalorder %s2376_s19, 4   ;;  %s2747_s13 = smov %s2270_s14 }
 0x9b3   : > { %s2748_s14 = smov %s2274_s15  ;;  %s2749_s15 = smov %s2387_s22 }
 0x9b4   : > { %s2750_s16 = smov %s2376_s19  ;;  %22 = sbr.rel (!%p20_p2) target bundleno = 3 (0x3), region = 107 }
 0x9b9   :  { %1826 = vsyncpa [#allocation7], 1 }
 0x9ba   :  { %1828 = vsyncpa [#allocation7 + $0x1], 1 }

</bundles_post_ra>
